<compile_context>
chip_gen: v7x
topology: tpu7x:2x2x1
jax: 0.10.0
libtpu: 0.0.40
codegen_flags: <defaults>
</compile_context>

<pallas_src>
import jax
import jax.numpy as jnp
import numpy as np
from jax.experimental import pallas as pl
from jax.experimental.pallas import tpu as pltpu

K = 3          # TAGConv default number of hops
HP = 128       # padded channel width (one full lane tile)
OUT_PAD = 128  # padded output width of the final Linear


def make_kernel(num_layers: int):
    """Fused forward kernel.

    Ref order:
      A        bf16 [N, N]
      x        f32  [N, HP]
      W        bf16 [L, (K+1)*HP, HP]   (hops stacked along rows, per layer)
      b        f32  [L, 1, HP]
      maskT    f32  [G, N]
      maxbias  f32  [G, N, 1]           (0 for member nodes, -1e30 otherwise)
      inv_cnt  f32  [G, 1]
      fcw      f32  [L, 2*HP, OUT_PAD]  (rows 0:HP act on gmp(h_l), HP:2HP on gap(h_l))
      fcb      f32  [1, OUT_PAD]
      out      f32  [G, OUT_PAD]
    """

    def kernel(a_ref, x_ref, w_ref, b_ref, maskT_ref, maxbias_ref, invc_ref,
               fcw_ref, fcb_ref, out_ref):
        A = a_ref[...]                    # [N, N] bf16 (hoisted once)
        h = x_ref[...]                    # [N, HP] f32 (padded columns are exactly 0)
        maskT = maskT_ref[...]            # [G, N] f32
        maxbias = maxbias_ref[...]        # [G, N, 1] f32
        invc = invc_ref[...]              # [G, 1] f32

        G = out_ref.shape[0]
        acc = jnp.zeros((G, OUT_PAD), jnp.float32)   # running fc(pooled) accumulator

        for layer in range(num_layers):
            w = w_ref[layer]              # [(K+1)*HP, HP] bf16
            b = b_ref[layer]              # [1, HP] f32

            # Serial K-hop propagation chain; hops kept in bf16 for the MXU.
            p = h.astype(jnp.bfloat16)
            hops = [p]
            for _ in range(K):
                p = jnp.dot(A, p, preferred_element_type=jnp.float32).astype(jnp.bfloat16)
                hops.append(p)

            # One wide matmul for all K+1 hop weights (lane-aligned 128-wide slabs).
            P = jnp.concatenate(hops, axis=1)                     # [N, (K+1)*HP] bf16
            z = jnp.dot(P, w, preferred_element_type=jnp.float32) + b
            h = jnp.maximum(z, 0.0)                               # ReLU, [N, HP] f32

            # --- per-layer global mean pool: one matmul + precomputed 1/count ---
            sums = jnp.dot(maskT, h, preferred_element_type=jnp.float32)   # [G, HP]
            means = sums * invc                                            # [G, HP]

            # --- per-layer global max pool: masked broadcast + node-axis reduction ---
            # maxbias is 0 for member nodes and -1e30 otherwise; ReLU outputs are >= 0,
            # so the max always comes from a member node.
            masked = h[None, :, :] + maxbias                      # [G, N, HP]
            maxs = jnp.max(masked, axis=1)                        # [G, HP]

            # --- fold this layer's slice of the final Linear into the accumulator ---
            pooled = jnp.concatenate([maxs, means], axis=1)       # [G, 2*HP]
            acc = acc + jnp.dot(pooled, fcw_ref[layer],
                                preferred_element_type=jnp.float32)

        out_ref[...] = (acc + fcb_ref[...]).astype(out_ref.dtype)

    return kernel


def tag_jk_forward(A_hat, x, Ws, bs, mask, fc_w, fc_b):
    N = x.shape[0]
    num_layers = len(Ws)
    G = mask.shape[1]
    H = Ws[0].shape[2]                    # hidden width (8)
    OUT = fc_w.shape[1]                   # number of classes (2)
    C = num_layers * H
    assert H <= HP and x.shape[1] <= HP and OUT <= OUT_PAD

    # --- host-side (one-time) padding / restructuring of parameters ---
    A_bf = A_hat.astype(jnp.bfloat16)
    x_pad = jnp.zeros((N, HP), jnp.float32).at[:, :x.shape[1]].set(x)

    W_stack = []
    b_stack = []
    for W, b in zip(Ws, bs):
        kp1, cin, cout = W.shape
        Wp = jnp.zeros((kp1 * HP, HP), jnp.float32)
        for k in range(kp1):
            Wp = Wp.at[k * HP:k * HP + cin, :cout].set(W[k])
        W_stack.append(Wp)
        b_stack.append(jnp.zeros((1, HP), jnp.float32).at[:, :cout].set(b))
    W_stack = jnp.stack(W_stack, axis=0).astype(jnp.bfloat16)       # [L, (K+1)*HP, HP]
    b_stack = jnp.stack(b_stack, axis=0)                            # [L, 1, HP]

    maskT = mask.T.astype(jnp.float32)                               # [G, N]
    maxbias = ((mask.T - 1.0) * 1e30)[:, :, None].astype(jnp.float32)  # [G, N, 1]
    inv_cnt = (1.0 / jnp.maximum(mask.sum(axis=0), 1.0))[:, None]    # [G, 1]

    # fc weight rows in torch.cat order: first C rows act on gmp(xcat), next C on gap(xcat);
    # within each half, layer l owns rows l*H:(l+1)*H.  Per-layer slab: [2*HP, OUT_PAD]
    # with rows 0:HP for gmp(h_l) and HP:2*HP for gap(h_l).
    fcw_layers = []
    for l in range(num_layers):
        slab = jnp.zeros((2 * HP, OUT_PAD), jnp.float32)
        slab = slab.at[:H, :OUT].set(fc_w[l * H:(l + 1) * H, :])
        slab = slab.at[HP:HP + H, :OUT].set(fc_w[C + l * H:C + (l + 1) * H, :])
        fcw_layers.append(slab)
    fcw_stack = jnp.stack(fcw_layers, axis=0)                        # [L, 2*HP, OUT_PAD]
    fcb_pad = jnp.zeros((1, OUT_PAD), jnp.float32).at[:, :OUT].set(fc_b)

    inputs = [A_bf, x_pad, W_stack, b_stack, maskT, maxbias, inv_cnt,
              fcw_stack, fcb_pad]

    # Size the scoped-VMEM limit to the working set (+ temporaries + headroom).
    nbytes = sum(int(np.prod(a.shape)) * a.dtype.itemsize for a in inputs)
    nbytes += G * OUT_PAD * 4                 # output
    nbytes += 2 * (K + 1) * N * HP * 2        # hop chain + concatenated P (bf16)
    nbytes += 2 * N * HP * 4                  # z / h (f32)
    nbytes += G * N * HP * 4                  # per-layer max-pool broadcast temp
    vmem_limit = int(min(max(2 * nbytes + (8 << 20), 32 << 20), 64 << 20))

    vmem = pl.BlockSpec(memory_space=pltpu.MemorySpace.VMEM)
    out_pad = pl.pallas_call(
        make_kernel(num_layers),
        out_shape=jax.ShapeDtypeStruct((G, OUT_PAD), jnp.float32),
        in_specs=[vmem] * len(inputs),
        out_specs=vmem,
        compiler_params=pltpu.CompilerParams(vmem_limit_bytes=vmem_limit),
    )(*inputs)
    return out_pad[:, :OUT]


def reference_forward(A_hat, x, Ws, bs, mask, fc_w, fc_b, matmul_dtype=jnp.float32):
    """Pure-JAX reference. matmul_dtype=bf16 mirrors the kernel's MXU input precision
    (bf16 operands, f32 accumulation); matmul_dtype=f32 is the full-precision module."""
    hp = jax.lax.Precision.HIGHEST

    def mm(a, b):
        return jnp.dot(a.astype(matmul_dtype), b.astype(matmul_dtype),
                       preferred_element_type=jnp.float32, precision=hp)

    h = x
    xs = []
    for w, b in zip(Ws, bs):
        z = mm(h, w[0])
        p = h
        for k in range(1, K + 1):
            p = mm(A_hat, p)
            z = z + mm(p, w[k])
        h = jax.nn.relu(z + b)
        xs.append(h)
    xcat = jnp.concatenate(xs, axis=1)
    G = mask.shape[1]
    sums = jnp.dot(mask.T, xcat, precision=hp)
    cnts = jnp.maximum(mask.sum(axis=0), 1.0)
    means = sums / cnts[:, None]
    maxs = jnp.stack(
        [jnp.max(jnp.where(mask[:, g:g + 1] > 0.5, xcat, -1e30), axis=0)
         for g in range(G)], axis=0)
    pooled = jnp.concatenate([maxs, means], axis=1)
    return jnp.dot(pooled, fc_w, precision=hp) + fc_b


def gcn_norm_dense(edge_index, edge_weight, num_nodes):
    """gcn_norm (no self loops) densified: A_hat[i, j] = dinv[i] * w(j->i) * dinv[j]."""
    src, dst = edge_index
    A = jnp.zeros((num_nodes, num_nodes), jnp.float32).at[dst, src].add(edge_weight)
    deg = A.sum(axis=1)
    dinv = jnp.where(deg > 0, 1.0 / jnp.sqrt(deg), 0.0)
    return dinv[:, None] * A * dinv[None, :]


if __name__ == "__main__":
    # small deterministic problem
    num_features = 4
    num_layers = 3
    hidden = 8
    N = 16            # nodes (two graphs of 8 nodes each)
    G = 2             # graphs in the batch

    key = jax.random.PRNGKey(0)
    kx, kw, kfc, kew = jax.random.split(key, 4)

    # node features  x: [N, num_features]
    x = jax.random.normal(kx, (N, num_features), jnp.float32)

    # two disjoint ring graphs (bidirectional edges), batch = [0]*8 + [1]*8
    src_list, dst_list = [], []
    for start in (0, 8):
        for i in range(8):
            a, b = start + i, start + (i + 1) % 8
            src_list += [a, b]
            dst_list += [b, a]
    edge_index = jnp.array([src_list, dst_list], dtype=jnp.int32)   # [2, E]
    E = edge_index.shape[1]
    edge_weight = 1.0 + jax.random.uniform(kew, (E,), jnp.float32)  # data.edge_attr
    batch = jnp.array([0] * 8 + [1] * 8, dtype=jnp.int32)

    # glue: densify + normalize adjacency, build one-hot pooling mask [N, G]
    A_hat = gcn_norm_dense(edge_index, edge_weight, N)
    mask = (batch[:, None] == jnp.arange(G)[None, :]).astype(jnp.float32)

    # deterministic parameter init (TAGConv: K+1 weight mats + bias per layer)
    Ws, bs = [], []
    in_dims = [num_features] + [hidden] * (num_layers - 1)
    wkeys = jax.random.split(kw, num_layers)
    for layer in range(num_layers):
        Ws.append(0.1 * jax.random.normal(
            wkeys[layer], (K + 1, in_dims[layer], hidden), jnp.float32))
        bs.append(0.01 * jnp.ones((1, hidden), jnp.float32))
    fc_w = 0.1 * jax.random.normal(kfc, (2 * num_layers * hidden, 2), jnp.float32)
    fc_b = 0.01 * jnp.ones((1, 2), jnp.float32)

    out = tag_jk_forward(A_hat, x, Ws, bs, mask, fc_w, fc_b)
    out = jax.block_until_ready(out)
    assert out.shape == (G, 2)

    # tight check: reference with the same bf16-in / f32-accumulate matmul precision
    ref_bf16 = reference_forward(A_hat, x, Ws, bs, mask, fc_w, fc_b,
                                 matmul_dtype=jnp.bfloat16)
    np.testing.assert_allclose(np.asarray(out), np.asarray(ref_bf16),
                               rtol=2e-3, atol=2e-3)

    # loose sanity check against the full-f32 reference (bf16 propagation error budget)
    ref_f32 = reference_forward(A_hat, x, Ws, bs, mask, fc_w, fc_b,
                                matmul_dtype=jnp.float32)
    np.testing.assert_allclose(np.asarray(out), np.asarray(ref_f32),
                               rtol=1e-1, atol=1e-1)

    print("KERNEL_OK")
</pallas_src>

<mosaic_0001>
module attributes {stable_mosaic.version = 11 : i64} {
  func.func @kernel(%arg0: memref<16x16xbf16, #tpu.memory_space<vmem>>, %arg1: memref<16x128xf32, #tpu.memory_space<vmem>>, %arg2: memref<3x512x128xbf16, #tpu.memory_space<vmem>>, %arg3: memref<3x1x128xf32, #tpu.memory_space<vmem>>, %arg4: memref<2x16xf32, #tpu.memory_space<vmem>>, %arg5: memref<2x16x1xf32, #tpu.memory_space<vmem>>, %arg6: memref<2x1xf32, #tpu.memory_space<vmem>>, %arg7: memref<3x256x128xf32, #tpu.memory_space<vmem>>, %arg8: memref<1x128xf32, #tpu.memory_space<vmem>>, %arg9: memref<2x128xf32, #tpu.memory_space<vmem>>) attributes {dimension_semantics = [], scalar_prefetch = 0 : i64, scratch_operands = 0 : i64, tpu.core_type = #tpu.core_type<tc>} {
    %c0 = arith.constant 0 : index
    %c0_0 = arith.constant 0 : index
    %0 = vector.load %arg0[%c0, %c0_0] : memref<16x16xbf16, #tpu.memory_space<vmem>>, vector<16x16xbf16>
    %c0_1 = arith.constant 0 : index
    %c0_2 = arith.constant 0 : index
    %1 = vector.load %arg1[%c0_1, %c0_2] : memref<16x128xf32, #tpu.memory_space<vmem>>, vector<16x128xf32>
    %c0_3 = arith.constant 0 : index
    %c0_4 = arith.constant 0 : index
    %2 = vector.load %arg4[%c0_3, %c0_4] : memref<2x16xf32, #tpu.memory_space<vmem>>, vector<2x16xf32>
    %c0_5 = arith.constant 0 : index
    %c0_6 = arith.constant 0 : index
    %c0_7 = arith.constant 0 : index
    %3 = vector.load %arg5[%c0_5, %c0_6, %c0_7] : memref<2x16x1xf32, #tpu.memory_space<vmem>>, vector<2x16x1xf32>
    %c0_8 = arith.constant 0 : index
    %c0_9 = arith.constant 0 : index
    %4 = vector.load %arg6[%c0_8, %c0_9] : memref<2x1xf32, #tpu.memory_space<vmem>>, vector<2x1xf32>
    %cst = arith.constant 0.000000e+00 : f32
    %5 = vector.broadcast %cst : f32 to vector<2x128xf32>
    %c0_10 = arith.constant 0 : index
    %c0_11 = arith.constant 0 : index
    %c0_12 = arith.constant 0 : index
    %6 = vector.load %arg2[%c0_10, %c0_11, %c0_12] : memref<3x512x128xbf16, #tpu.memory_space<vmem>>, vector<1x512x128xbf16>
    %7 = vector.shape_cast %6 : vector<1x512x128xbf16> to vector<512x128xbf16>
    %c0_13 = arith.constant 0 : index
    %c0_14 = arith.constant 0 : index
    %c0_15 = arith.constant 0 : index
    %8 = vector.load %arg3[%c0_13, %c0_14, %c0_15] : memref<3x1x128xf32, #tpu.memory_space<vmem>>, vector<1x1x128xf32>
    %9 = vector.shape_cast %8 : vector<1x1x128xf32> to vector<1x128xf32>
    %10 = arith.truncf %1 : vector<16x128xf32> to vector<16x128xbf16>
    %cst_16 = arith.constant dense<0.000000e+00> : vector<16x128xf32>
    %11 = tpu.matmul %0, %10, %cst_16 {dimension_numbers = #tpu.dot_dimension_numbers<[1], [0], [0], [1], [0, 0, 1, 1], [], []>} : vector<16x16xbf16>, vector<16x128xbf16>, vector<16x128xf32> -> vector<16x128xf32>
    %12 = arith.truncf %11 : vector<16x128xf32> to vector<16x128xbf16>
    %cst_17 = arith.constant dense<0.000000e+00> : vector<16x128xf32>
    %13 = tpu.matmul %0, %12, %cst_17 {dimension_numbers = #tpu.dot_dimension_numbers<[1], [0], [0], [1], [0, 0, 1, 1], [], []>} : vector<16x16xbf16>, vector<16x128xbf16>, vector<16x128xf32> -> vector<16x128xf32>
    %14 = arith.truncf %13 : vector<16x128xf32> to vector<16x128xbf16>
    %cst_18 = arith.constant dense<0.000000e+00> : vector<16x128xf32>
    %15 = tpu.matmul %0, %14, %cst_18 {dimension_numbers = #tpu.dot_dimension_numbers<[1], [0], [0], [1], [0, 0, 1, 1], [], []>} : vector<16x16xbf16>, vector<16x128xbf16>, vector<16x128xf32> -> vector<16x128xf32>
    %16 = arith.truncf %15 : vector<16x128xf32> to vector<16x128xbf16>
    %17 = tpu.concatenate %10, %12, %14, %16 in 1 : vector<16x128xbf16>, vector<16x128xbf16>, vector<16x128xbf16>, vector<16x128xbf16> -> vector<16x512xbf16>
    %cst_19 = arith.constant dense<0.000000e+00> : vector<16x128xf32>
    %18 = tpu.matmul %17, %7, %cst_19 {dimension_numbers = #tpu.dot_dimension_numbers<[1], [0], [0], [1], [0, 0, 1, 1], [], []>} : vector<16x512xbf16>, vector<512x128xbf16>, vector<16x128xf32> -> vector<16x128xf32>
    %19 = vector.broadcast %9 : vector<1x128xf32> to vector<16x128xf32>
    %20 = arith.addf %18, %19 : vector<16x128xf32>
    %cst_20 = arith.constant 0.000000e+00 : f32
    %21 = vector.broadcast %cst_20 : f32 to vector<16x128xf32>
    %22 = arith.maximumf %20, %21 : vector<16x128xf32>
    %cst_21 = arith.constant dense<0.000000e+00> : vector<2x128xf32>
    %23 = tpu.matmul %2, %22, %cst_21 {dimension_numbers = #tpu.dot_dimension_numbers<[1], [0], [0], [1], [0, 0, 1, 1], [], []>} : vector<2x16xf32>, vector<16x128xf32>, vector<2x128xf32> -> vector<2x128xf32>
    %24 = vector.broadcast %4 : vector<2x1xf32> to vector<2x128xf32>
    %25 = arith.mulf %23, %24 : vector<2x128xf32>
    %26 = vector.shape_cast %22 : vector<16x128xf32> to vector<1x16x128xf32>
    %27 = vector.broadcast %26 : vector<1x16x128xf32> to vector<2x16x128xf32>
    %28 = vector.broadcast %3 : vector<2x16x1xf32> to vector<2x16x128xf32>
    %29 = arith.addf %27, %28 : vector<2x16x128xf32>
    %cst_22 = arith.constant dense<0xFF800000> : vector<2x128xf32>
    %30 = vector.multi_reduction <maximumf>, %29, %cst_22 [1] : vector<2x16x128xf32> to vector<2x128xf32>
    %31 = tpu.concatenate %30, %25 in 1 : vector<2x128xf32>, vector<2x128xf32> -> vector<2x256xf32>
    %c0_23 = arith.constant 0 : index
    %c0_24 = arith.constant 0 : index
    %c0_25 = arith.constant 0 : index
    %32 = vector.load %arg7[%c0_23, %c0_24, %c0_25] : memref<3x256x128xf32, #tpu.memory_space<vmem>>, vector<1x256x128xf32>
    %33 = vector.shape_cast %32 : vector<1x256x128xf32> to vector<256x128xf32>
    %cst_26 = arith.constant dense<0.000000e+00> : vector<2x128xf32>
    %34 = tpu.matmul %31, %33, %cst_26 {dimension_numbers = #tpu.dot_dimension_numbers<[1], [0], [0], [1], [0, 0, 1, 1], [], []>} : vector<2x256xf32>, vector<256x128xf32>, vector<2x128xf32> -> vector<2x128xf32>
    %35 = arith.addf %5, %34 : vector<2x128xf32>
    %c1 = arith.constant 1 : index
    %c0_27 = arith.constant 0 : index
    %c0_28 = arith.constant 0 : index
    %36 = vector.load %arg2[%c1, %c0_27, %c0_28] : memref<3x512x128xbf16, #tpu.memory_space<vmem>>, vector<1x512x128xbf16>
    %37 = vector.shape_cast %36 : vector<1x512x128xbf16> to vector<512x128xbf16>
    %c1_29 = arith.constant 1 : index
    %c0_30 = arith.constant 0 : index
    %c0_31 = arith.constant 0 : index
    %38 = vector.load %arg3[%c1_29, %c0_30, %c0_31] : memref<3x1x128xf32, #tpu.memory_space<vmem>>, vector<1x1x128xf32>
    %39 = vector.shape_cast %38 : vector<1x1x128xf32> to vector<1x128xf32>
    %40 = arith.truncf %22 : vector<16x128xf32> to vector<16x128xbf16>
    %cst_32 = arith.constant dense<0.000000e+00> : vector<16x128xf32>
    %41 = tpu.matmul %0, %40, %cst_32 {dimension_numbers = #tpu.dot_dimension_numbers<[1], [0], [0], [1], [0, 0, 1, 1], [], []>} : vector<16x16xbf16>, vector<16x128xbf16>, vector<16x128xf32> -> vector<16x128xf32>
    %42 = arith.truncf %41 : vector<16x128xf32> to vector<16x128xbf16>
    %cst_33 = arith.constant dense<0.000000e+00> : vector<16x128xf32>
    %43 = tpu.matmul %0, %42, %cst_33 {dimension_numbers = #tpu.dot_dimension_numbers<[1], [0], [0], [1], [0, 0, 1, 1], [], []>} : vector<16x16xbf16>, vector<16x128xbf16>, vector<16x128xf32> -> vector<16x128xf32>
    %44 = arith.truncf %43 : vector<16x128xf32> to vector<16x128xbf16>
    %cst_34 = arith.constant dense<0.000000e+00> : vector<16x128xf32>
    %45 = tpu.matmul %0, %44, %cst_34 {dimension_numbers = #tpu.dot_dimension_numbers<[1], [0], [0], [1], [0, 0, 1, 1], [], []>} : vector<16x16xbf16>, vector<16x128xbf16>, vector<16x128xf32> -> vector<16x128xf32>
    %46 = arith.truncf %45 : vector<16x128xf32> to vector<16x128xbf16>
    %47 = tpu.concatenate %40, %42, %44, %46 in 1 : vector<16x128xbf16>, vector<16x128xbf16>, vector<16x128xbf16>, vector<16x128xbf16> -> vector<16x512xbf16>
    %cst_35 = arith.constant dense<0.000000e+00> : vector<16x128xf32>
    %48 = tpu.matmul %47, %37, %cst_35 {dimension_numbers = #tpu.dot_dimension_numbers<[1], [0], [0], [1], [0, 0, 1, 1], [], []>} : vector<16x512xbf16>, vector<512x128xbf16>, vector<16x128xf32> -> vector<16x128xf32>
    %49 = vector.broadcast %39 : vector<1x128xf32> to vector<16x128xf32>
    %50 = arith.addf %48, %49 : vector<16x128xf32>
    %cst_36 = arith.constant 0.000000e+00 : f32
    %51 = vector.broadcast %cst_36 : f32 to vector<16x128xf32>
    %52 = arith.maximumf %50, %51 : vector<16x128xf32>
    %cst_37 = arith.constant dense<0.000000e+00> : vector<2x128xf32>
    %53 = tpu.matmul %2, %52, %cst_37 {dimension_numbers = #tpu.dot_dimension_numbers<[1], [0], [0], [1], [0, 0, 1, 1], [], []>} : vector<2x16xf32>, vector<16x128xf32>, vector<2x128xf32> -> vector<2x128xf32>
    %54 = vector.broadcast %4 : vector<2x1xf32> to vector<2x128xf32>
    %55 = arith.mulf %53, %54 : vector<2x128xf32>
    %56 = vector.shape_cast %52 : vector<16x128xf32> to vector<1x16x128xf32>
    %57 = vector.broadcast %56 : vector<1x16x128xf32> to vector<2x16x128xf32>
    %58 = vector.broadcast %3 : vector<2x16x1xf32> to vector<2x16x128xf32>
    %59 = arith.addf %57, %58 : vector<2x16x128xf32>
    %cst_38 = arith.constant dense<0xFF800000> : vector<2x128xf32>
    %60 = vector.multi_reduction <maximumf>, %59, %cst_38 [1] : vector<2x16x128xf32> to vector<2x128xf32>
    %61 = tpu.concatenate %60, %55 in 1 : vector<2x128xf32>, vector<2x128xf32> -> vector<2x256xf32>
    %c1_39 = arith.constant 1 : index
    %c0_40 = arith.constant 0 : index
    %c0_41 = arith.constant 0 : index
    %62 = vector.load %arg7[%c1_39, %c0_40, %c0_41] : memref<3x256x128xf32, #tpu.memory_space<vmem>>, vector<1x256x128xf32>
    %63 = vector.shape_cast %62 : vector<1x256x128xf32> to vector<256x128xf32>
    %cst_42 = arith.constant dense<0.000000e+00> : vector<2x128xf32>
    %64 = tpu.matmul %61, %63, %cst_42 {dimension_numbers = #tpu.dot_dimension_numbers<[1], [0], [0], [1], [0, 0, 1, 1], [], []>} : vector<2x256xf32>, vector<256x128xf32>, vector<2x128xf32> -> vector<2x128xf32>
    %65 = arith.addf %35, %64 : vector<2x128xf32>
    %c2 = arith.constant 2 : index
    %c0_43 = arith.constant 0 : index
    %c0_44 = arith.constant 0 : index
    %66 = vector.load %arg2[%c2, %c0_43, %c0_44] : memref<3x512x128xbf16, #tpu.memory_space<vmem>>, vector<1x512x128xbf16>
    %67 = vector.shape_cast %66 : vector<1x512x128xbf16> to vector<512x128xbf16>
    %c2_45 = arith.constant 2 : index
    %c0_46 = arith.constant 0 : index
    %c0_47 = arith.constant 0 : index
    %68 = vector.load %arg3[%c2_45, %c0_46, %c0_47] : memref<3x1x128xf32, #tpu.memory_space<vmem>>, vector<1x1x128xf32>
    %69 = vector.shape_cast %68 : vector<1x1x128xf32> to vector<1x128xf32>
    %70 = arith.truncf %52 : vector<16x128xf32> to vector<16x128xbf16>
    %cst_48 = arith.constant dense<0.000000e+00> : vector<16x128xf32>
    %71 = tpu.matmul %0, %70, %cst_48 {dimension_numbers = #tpu.dot_dimension_numbers<[1], [0], [0], [1], [0, 0, 1, 1], [], []>} : vector<16x16xbf16>, vector<16x128xbf16>, vector<16x128xf32> -> vector<16x128xf32>
    %72 = arith.truncf %71 : vector<16x128xf32> to vector<16x128xbf16>
    %cst_49 = arith.constant dense<0.000000e+00> : vector<16x128xf32>
    %73 = tpu.matmul %0, %72, %cst_49 {dimension_numbers = #tpu.dot_dimension_numbers<[1], [0], [0], [1], [0, 0, 1, 1], [], []>} : vector<16x16xbf16>, vector<16x128xbf16>, vector<16x128xf32> -> vector<16x128xf32>
    %74 = arith.truncf %73 : vector<16x128xf32> to vector<16x128xbf16>
    %cst_50 = arith.constant dense<0.000000e+00> : vector<16x128xf32>
    %75 = tpu.matmul %0, %74, %cst_50 {dimension_numbers = #tpu.dot_dimension_numbers<[1], [0], [0], [1], [0, 0, 1, 1], [], []>} : vector<16x16xbf16>, vector<16x128xbf16>, vector<16x128xf32> -> vector<16x128xf32>
    %76 = arith.truncf %75 : vector<16x128xf32> to vector<16x128xbf16>
    %77 = tpu.concatenate %70, %72, %74, %76 in 1 : vector<16x128xbf16>, vector<16x128xbf16>, vector<16x128xbf16>, vector<16x128xbf16> -> vector<16x512xbf16>
    %cst_51 = arith.constant dense<0.000000e+00> : vector<16x128xf32>
    %78 = tpu.matmul %77, %67, %cst_51 {dimension_numbers = #tpu.dot_dimension_numbers<[1], [0], [0], [1], [0, 0, 1, 1], [], []>} : vector<16x512xbf16>, vector<512x128xbf16>, vector<16x128xf32> -> vector<16x128xf32>
    %79 = vector.broadcast %69 : vector<1x128xf32> to vector<16x128xf32>
    %80 = arith.addf %78, %79 : vector<16x128xf32>
    %cst_52 = arith.constant 0.000000e+00 : f32
    %81 = vector.broadcast %cst_52 : f32 to vector<16x128xf32>
    %82 = arith.maximumf %80, %81 : vector<16x128xf32>
    %cst_53 = arith.constant dense<0.000000e+00> : vector<2x128xf32>
    %83 = tpu.matmul %2, %82, %cst_53 {dimension_numbers = #tpu.dot_dimension_numbers<[1], [0], [0], [1], [0, 0, 1, 1], [], []>} : vector<2x16xf32>, vector<16x128xf32>, vector<2x128xf32> -> vector<2x128xf32>
    %84 = vector.broadcast %4 : vector<2x1xf32> to vector<2x128xf32>
    %85 = arith.mulf %83, %84 : vector<2x128xf32>
    %86 = vector.shape_cast %82 : vector<16x128xf32> to vector<1x16x128xf32>
    %87 = vector.broadcast %86 : vector<1x16x128xf32> to vector<2x16x128xf32>
    %88 = vector.broadcast %3 : vector<2x16x1xf32> to vector<2x16x128xf32>
    %89 = arith.addf %87, %88 : vector<2x16x128xf32>
    %cst_54 = arith.constant dense<0xFF800000> : vector<2x128xf32>
    %90 = vector.multi_reduction <maximumf>, %89, %cst_54 [1] : vector<2x16x128xf32> to vector<2x128xf32>
    %91 = tpu.concatenate %90, %85 in 1 : vector<2x128xf32>, vector<2x128xf32> -> vector<2x256xf32>
    %c2_55 = arith.constant 2 : index
    %c0_56 = arith.constant 0 : index
    %c0_57 = arith.constant 0 : index
    %92 = vector.load %arg7[%c2_55, %c0_56, %c0_57] : memref<3x256x128xf32, #tpu.memory_space<vmem>>, vector<1x256x128xf32>
    %93 = vector.shape_cast %92 : vector<1x256x128xf32> to vector<256x128xf32>
    %cst_58 = arith.constant dense<0.000000e+00> : vector<2x128xf32>
    %94 = tpu.matmul %91, %93, %cst_58 {dimension_numbers = #tpu.dot_dimension_numbers<[1], [0], [0], [1], [0, 0, 1, 1], [], []>} : vector<2x256xf32>, vector<256x128xf32>, vector<2x128xf32> -> vector<2x128xf32>
    %95 = arith.addf %65, %94 : vector<2x128xf32>
    %c0_59 = arith.constant 0 : index
    %c0_60 = arith.constant 0 : index
    %96 = vector.load %arg8[%c0_59, %c0_60] : memref<1x128xf32, #tpu.memory_space<vmem>>, vector<1x128xf32>
    %97 = vector.broadcast %96 : vector<1x128xf32> to vector<2x128xf32>
    %98 = arith.addf %95, %97 : vector<2x128xf32>
    %c0_61 = arith.constant 0 : index
    %c0_62 = arith.constant 0 : index
    %99 = vector.load %arg9[%c0_61, %c0_62] : memref<2x128xf32, #tpu.memory_space<vmem>>, vector<2x128xf32>
    tpu.vector_store %arg9[%c0_61, %c0_62], %98 {strides = array<i32>} : memref<2x128xf32, #tpu.memory_space<vmem>>, vector<2x128xf32>,
    return
  }
}

</mosaic_0001>

<bundles_post_ra>
// kernel: tpu_custom_call.1
= control target key start
LH: loop header
LB: loop body
LE: loop exit
PB: predicated region body
PF: predicated region fallthrough
CT: control target
= control target key end

     0   :  { %14 = vsyncpa [#allocation3], 0  ;;  %s3155_s0 = inlined_call_operand.vmem [shape: bf16[16,16], index: 0, kind: input, shape index: {}]   ;;  %s3156_s1 = inlined_call_operand.vmem [shape: f32[16,128], index: 1, kind: input, shape index: {}]   ;;  %s3157_s2 = inlined_call_operand.hbm [shape: bf16[3,512,128], index: 2, kind: input, shape index: {}]   ;;  %s3158_s3 = inlined_call_operand.vmem [shape: f32[3,1,128], index: 3, kind: input, shape index: {}]   ;;  %s3159_s4 = inlined_call_operand.vmem [shape: f32[2,16], index: 4, kind: input, shape index: {}]   ;;  %s3160_s5 = inlined_call_operand.vmem [shape: f32[2,16,1], index: 5, kind: input, shape index: {}]   ;;  %s3161_s6 = inlined_call_operand.vmem [shape: f32[2,1], index: 6, kind: input, shape index: {}]   ;;  %s3162_s7 = inlined_call_operand.hbm [shape: f32[3,256,128], index: 7, kind: input, shape index: {}]   ;;  %s3163_s8 = inlined_call_operand.vmem [shape: f32[1,128], index: 8, kind: input, shape index: {}]   ;;  %s3164_s9 = inlined_call_operand.hbm [shape: f32[2,128], index: 9, kind: output, shape index: {}]  }
   0x1   :  { %15 = vsyncpa [#allocation6], 0 }
   0x2   :  { %16 = vsyncpa [#allocation4], 0  ;;  %s2891_s30 = smov [#allocation2]   ;;  %s2819_s13 = scalar_lea.hbm %s3157_s2, 12288 }
   0x3   :  { %s26_s10 = sshll.u32 %s2891_s30, 4  ;;  %p2820_p0 = scmp.ne.s32.totalorder %s3157_s2, %s2819_s13  ;;  %s27_s10 = int_to_ptr.vmem [resolvable:$true] %s26_s10 }
   0x4   :  { %p2823_p1 = scmp.lt.u32.totalorder %s2819_s13, %s3157_s2 }
   0x6   :  { %p2825_p2 = pnand %p2823_p1, %p2820_p0 }
   0x8   :  { %2828 = shalt.err (!%p2825_p2)
}
   0x9   :  { %s2829_s18 = scalar_lea.vmem %s27_s10, 12288  ;;  %p2834_p4 = scmp.lt.s32.totalorder %s27_s10, %s27_s10 }
   0xa   :  { %p2830_p3 = scmp.ne.s32.totalorder %s27_s10, %s2829_s18  ;;  %p2835_p5 = scmp.lt.s32.totalorder %s2829_s18, %s2829_s18 }
   0xc   :  { %p2836_p6 = por %p2835_p5, %p2834_p4 }
   0xe   :  { %p2837_p7 = pnand %p2836_p6, %p2830_p3 }
  0x10   :  { %2840 = shalt.err (!%p2837_p7)
}
  0x11   :  { %s2892_s19 = smov 64   ;;  %s2893_s20 = smov 4  }
  0x12   :  { %32 = dma.hbm_to_vmem [thread:$0]  %s3157_s2, 12288, %s27_s10, [#allocation3], %s2892_s19, %s2892_s19, %s2893_s20  }
  0x13   :  { %s2894_s23 = smov [#allocation5]   ;;  %s2841_s27 = scalar_lea.hbm %s3162_s7, 12288 }
  0x14   :  { %s46_s24 = sshll.u32 %s2894_s23, 4  ;;  %p2842_p8 = scmp.ne.s32.totalorder %s3162_s7, %s2841_s27  ;;  %s47_s24 = int_to_ptr.vmem [resolvable:$true] %s46_s24 }
  0x15   :  { %p2845_p9 = scmp.lt.u32.totalorder %s2841_s27, %s3162_s7 }
  0x17   :  { %p2847_p10 = pnand %p2845_p9, %p2842_p8 }
  0x19   :  { %2850 = shalt.err (!%p2847_p10)
}
  0x1a   :  { %s2851_s12 = scalar_lea.vmem %s47_s24, 12288  ;;  %p2856_p12 = scmp.lt.s32.totalorder %s47_s24, %s47_s24 }
  0x1b   :  { %p2852_p11 = scmp.ne.s32.totalorder %s47_s24, %s2851_s12  ;;  %p2857_p13 = scmp.lt.s32.totalorder %s2851_s12, %s2851_s12 }
  0x1d   :  { %p2858_p0 = por %p2857_p13, %p2856_p12 }
  0x1f   :  { %p2859_p1 = pnand %p2858_p0, %p2852_p11 }
  0x21   :  { %2862 = shalt.err (!%p2859_p1)
}
  0x22   :  { %s2895_s2 = smov 128   ;;  %s2896_s10 = smov 8  }
  0x23   :  { %52 = dma.hbm_to_vmem [thread:$0]  %s3162_s7, 12288, %s47_s24, [#allocation6], %s2895_s2, %s2895_s2, %s2896_s10  }
  0x24   :  { %2885 = dma.done.wait [#allocation3], 12288  }
  0x25   :  { %2886 = vsyncadd [#allocation3], 4294955008 }
  0x26   :  { %2887 = dma.done.wait [#allocation6], 12288  }
  0x27   :  { %2888 = vsyncadd [#allocation6], 4294955008  ;;  %v2897_v0 = vmov 0.0   ;;  %vm2898_vm0 = vmmov 0   ;;  %v64_v1 = vld [vmem:[%s3156_s1] sm:$0xff]  ;;  %v65_v2 = vld [vmem:[%s3156_s1 + $0x8] sm:$0xff] }
  0x28   :  { %2528 = vmatprep.subr.bf16.mxu0 %v2897_v0  ;;  %2530 = vmatprep.mubr.msk.bf16.mxu0 %vm2898_vm0, %v2897_v0  ;;  %v137_v3 = vpack.c.bf16 %v65_v2, %v64_v1  ;;  %v2988_v4 = vld [vmem:[%s3155_s0] sm:$0xff]   ;;  %vm143_vm1 = vcmask 130048   ;;  %v2724_v12 = vld [vmem:[#allocation2 + $0x48] sm:$0xff]   ;;  %v2728_v14 = vld [vmem:[#allocation2 + $0x50] sm:$0xff]   ;;  %v2899_v49 = vmov 0   ;;  %v2900_v63 = vmov 0.0|0.0  }
  0x29   :  { %v2722_v10 = vld [vmem:[#allocation2 + $0x40] sm:$0xff]   ;;  %v2725_v13 = vld [vmem:[#allocation2 + $0x8] sm:$0xff]   ;;  %v2729_v15 = vld [vmem:[#allocation2 + $0x10] sm:$0xff]   ;;  %2720 = vset.pattern.permute.xlu1 %v2899_v49  ;;  %2719 = vset.pattern.permute.xlu0 %v2899_v49  ;;  %vm674_vm2 = vcmask 1041409   ;;  %s2901_s14 = smov [#allocation7]  }
  0x2a   :  { %2529 = vmatpush3.bf16.msra.mxu0 %v137_v3  ;;  %v2723_v11 = vld [vmem:[#allocation2] sm:$0xff]   ;;  %2270 = vmatprep.subr.bf16.mxu1 %v2722_v10  ;;  %v2732_v16 = vld [vmem:[#allocation2 + $0x58] sm:$0xff]   ;;  %v2740_v20 = vld [vmem:[#allocation2 + $0x68] sm:$0xff]   ;;  %s2139_s15 = sshll.u32 %s2901_s14, 4  ;;  %s2140_s15 = int_to_ptr.vmem [resolvable:$true] %s2139_s15 }
  0x2b   :  { %2534 = vmatprep.subr.bf16.mxu0 %v2897_v0  ;;  %2271 = vmatpush3.bf16.msra.mxu1 %v2723_v11  ;;  %v2733_v17 = vld [vmem:[#allocation2 + $0x18] sm:$0xff]   ;;  %v2736_v18 = vld [vmem:[#allocation2 + $0x60] sm:$0xff]   ;;  %v2741_v21 = vld [vmem:[#allocation2 + $0x28] sm:$0xff]   ;;  %s2863_s16 = scalar_lea.vmem %s2140_s15, 32  ;;  %p2868_p3 = scmp.lt.s32.totalorder %s2140_s15, %s2140_s15 }
  0x2c   :  { %2272 = vmatprep.subr.bf16.mxu1 %v2724_v12  ;;  %v2737_v19 = vld [vmem:[#allocation2 + $0x20] sm:$0xff]   ;;  %v2744_v22 = vld [vmem:[#allocation2 + $0x70] sm:$0xff]   ;;  %v2748_v24 = vld [vmem:[#allocation2 + $0x78] sm:$0xff]   ;;  %p2864_p2 = scmp.ne.s32.totalorder %s2140_s15, %s2863_s16  ;;  %p2869_p4 = scmp.lt.s32.totalorder %s2863_s16, %s2863_s16 }
  0x2d   :  { %2531 = vmatmul.mubr.msk.bf16.vlgmr.msra.gmra.mrb[0].mxu0 %vm143_vm1, %v2988_v4  ;;  %v2745_v23 = vld [vmem:[#allocation2 + $0x30] sm:$0xff]   ;;  %v2749_v25 = vld [vmem:[#allocation2 + $0x38] sm:$0xff]   ;;  %v2726_v29 = vld [vmem:[#allocation2 + $0xc0] sm:$0xff]  }
  0x2e   :  { %2536 = vmatprep.mubr.msk.bf16.mxu0 %vm2898_vm0, %v2897_v0  ;;  %v2727_v32 = vld [vmem:[#allocation2 + $0x80] sm:$0xff]   ;;  %v2730_v33 = vld [vmem:[#allocation2 + $0xc8] sm:$0xff]   ;;  %v2734_v35 = vld [vmem:[#allocation2 + $0xd0] sm:$0xff]   ;;  %p2870_p5 = por %p2869_p4, %p2868_p3 }
  0x2f   :  { %2273 = vmatpush3.bf16.msra.mxu1 %v2725_v13  ;;  %v2731_v34 = vld [vmem:[#allocation2 + $0x88] sm:$0xff]   ;;  %v2735_v36 = vld [vmem:[#allocation2 + $0x90] sm:$0xff]   ;;  %v2738_v37 = vld [vmem:[#allocation2 + $0xd8] sm:$0xff]  }
  0x30   :  { %2274 = vmatprep.subr.bf16.mxu1 %v2728_v14  ;;  %v2739_v38 = vld [vmem:[#allocation2 + $0x98] sm:$0xff]   ;;  %v2742_v39 = vld [vmem:[#allocation2 + $0xe0] sm:$0xff]   ;;  %v2746_v41 = vld [vmem:[#allocation2 + $0xe8] sm:$0xff]   ;;  %p2871_p6 = pnand %p2870_p5, %p2864_p2 }
  0x31   :  { %v2743_v40 = vld [vmem:[#allocation2 + $0xa0] sm:$0xff]   ;;  %v2747_v42 = vld [vmem:[#allocation2 + $0xa8] sm:$0xff]   ;;  %v2750_v43 = vld [vmem:[#allocation2 + $0xf0] sm:$0xff]  }
  0x32   :  { %v2751_v44 = vld [vmem:[#allocation2 + $0xb0] sm:$0xff]   ;;  %v2752_v45 = vld [vmem:[#allocation2 + $0xf8] sm:$0xff]   ;;  %v67_v48 = vld [vmem:[%s3160_s5] sm:$0xff] }
  0x33   :  { %2275 = vmatpush3.bf16.msra.mxu1 %v2729_v15  ;;  %v2753_v46 = vld [vmem:[#allocation2 + $0xb8] sm:$0xff]   ;;  %v69_v47 = vld [vmem:[%s3160_s5 + $0x10] sm:$0xff]  ;;  %636 = vperm.xlu0 %2719, %v67_v48   ;;  %v68_v51 = vld [vmem:[%s3160_s5 + $0x8] sm:$0xff] }
  0x34   :  { %2276 = vmatprep.subr.bf16.mxu1 %v2732_v16  ;;  %646 = vperm.xlu1 %2720, %v69_v47   ;;  %v70_v50 = vld [vmem:[%s3160_s5 + $0x18] sm:$0xff]  ;;  %v2153_v1 = vld [vmem:[%s3158_s3] ss:$0 sm:$0xff]  ;;  %v2757_v47 = vld [vmem:[#allocation2 + $0x108] sm:$0xff]  }
  0x35   :  { %v2758_v48 = vld [vmem:[#allocation2 + $0x150] sm:$0xff]  }
  0x36   :  { %v2759_v49 = vld [vmem:[#allocation2 + $0x110] sm:$0xff]  }
  0x37   :  { %2277 = vmatpush3.bf16.msra.mxu1 %v2733_v17  ;;  %641 = vperm.xlu0 %2719, %v68_v51   ;;  %v2761_v51 = vld [vmem:[#allocation2 + $0x118] sm:$0xff]  }
  0x38   :  { %2278 = vmatprep.subr.bf16.mxu1 %v2736_v18  ;;  %651 = vperm.xlu1 %2720, %v70_v50   ;;  %v2760_v50 = vld [vmem:[#allocation2 + $0x158] sm:$0xff]  }
  0x3b   :  { %2279 = vmatpush3.bf16.msra.mxu1 %v2737_v19 }
  0x3c   :  { %2280 = vmatprep.subr.bf16.mxu1 %v2740_v20 }
  0x3f   :  { %2281 = vmatpush3.bf16.msra.mxu1 %v2741_v21 }
  0x40   :  { %2282 = vmatprep.subr.bf16.mxu1 %v2744_v22 }
  0x43   :  { %2283 = vmatpush3.bf16.msra.mxu1 %v2745_v23 }
  0x44   :  { %2284 = vmatprep.subr.bf16.mxu1 %v2748_v24 }
  0x47   :  { %2285 = vmatpush3.bf16.msra.mxu1 %v2749_v25 }
  0x48   :  { %2603 = vmatprep.subr.bf16.mxu1 %v2900_v63 }
 0x100   :  { %v181_v5 = vpop.f32.mrb[0].mxu0 }
 0x101   :  { %v2532_v6 = vpop.f32.mrb[1].mxu0 }
 0x102   :  { %v184_v7 = vpop.f32.mrb[2].mxu0 }
 0x103   :  { %v188_v8 = vpack.c.bf16 %v184_v7, %v181_v5  ;;  %v2533_v9 = vpop.f32.mrb[3].mxu0  ;;  %v3023_v5 = vpop.permute.xlu1 %646 }
 0x104   :  { %v3025_v7 = vpop.permute.xlu0 %636 }
 0x105   :  { %2535 = vmatpush3.bf16.msra.mxu0 %v188_v8  ;;  %503 = vmatprep.mubr.bf16.mxu1 %v188_v8 }
 0x106   :  { %2540 = vmatprep.subr.bf16.mxu0 %v2897_v0  ;;  %504 = vmatmul.mubr.bf16.vlgmr.msra.gmra.mrb[0].mxu1 %v137_v3 }
 0x107   :  { %2550 = vmatprep.mubr.msk.f32.mxu1 %vm2898_vm0, %v2897_v0  ;;  %v3027_v16 = vpop.permute.xlu1 %651 }
 0x108   :  { %2537 = vmatmul.mubr.msk.bf16.vlgmr.msra.gmra.mrb[4].mxu0 %vm143_vm1, %v2988_v4  ;;  %v3029_v17 = vpop.permute.xlu0 %641 }
 0x109   :  { %2542 = vmatprep.mubr.msk.bf16.mxu0 %vm2898_vm0, %v2897_v0 }
 0x1d9   :  { %v2286_v52 = vpop.f32.mrb[0].mxu1 }
 0x1da   :  { %v2287_v53 = vpop.f32.mrb[1].mxu1 }
 0x1db   :  { %v223_v26 = vpop.f32.mrb[4].mxu0  ;;  %v2288_v54 = vadd.f32 %v2287_v53, %v2286_v52  ;;  %v2289_v55 = vpop.f32.mrb[2].mxu1  ;;  %v2762_v52 = vld [vmem:[#allocation2 + $0x160] sm:$0xff]  }
 0x1dc   :  { %v2538_v27 = vpop.f32.mrb[5].mxu0  ;;  %v2290_v56 = vpop.f32.mrb[3].mxu1  ;;  %v2763_v53 = vld [vmem:[#allocation2 + $0x120] sm:$0xff]  }
 0x1dd   :  { %v226_v28 = vpop.f32.mrb[6].mxu0  ;;  %v2291_v57 = vadd.f32 %v2290_v56, %v2289_v55  ;;  %v506_v2 = vadd.f32 %v2288_v54, %v2153_v1  ;;  %v2764_v54 = vld [vmem:[#allocation2 + $0x168] sm:$0xff]   ;;  %v2766_v56 = vld [vmem:[#allocation2 + $0x170] sm:$0xff]  }
 0x1de   :  { %v230_v30 = vpack.c.bf16 %v226_v28, %v223_v26  ;;  %v2539_v31 = vpop.f32.mrb[7].mxu0  ;;  %v2765_v55 = vld [vmem:[#allocation2 + $0x128] sm:$0xff]  }
 0x1df   :  { %v509_v11 = vadd.f32 %v2291_v57, %v2153_v1  ;;  %v2767_v57 = vld [vmem:[#allocation2 + $0x130] sm:$0xff]  }
 0x1e0   :  { %2541 = vmatpush3.bf16.msra.mxu0 %v230_v30 }
 0x1e1   :  { %2292 = vmatprep.subr.bf16.mxu0 %v2726_v29 }
 0x1e3   :  { %2543 = vmatmul.mubr.msk.bf16.vlgmr.msra.gmra.mrb[8].mxu0 %vm143_vm1, %v2988_v4 }
 0x1e4   :  { %2293 = vmatpush3.bf16.msra.mxu0 %v2727_v32 }
 0x1e5   :  { %2294 = vmatprep.subr.bf16.mxu0 %v2730_v33 }
 0x1e8   :  { %2295 = vmatpush3.bf16.msra.mxu0 %v2731_v34 }
 0x1e9   :  { %2296 = vmatprep.subr.bf16.mxu0 %v2734_v35 }
 0x1ec   :  { %2297 = vmatpush3.bf16.msra.mxu0 %v2735_v36 }
 0x1ed   :  { %2298 = vmatprep.subr.bf16.mxu0 %v2738_v37 }
 0x1f0   :  { %2299 = vmatpush3.bf16.msra.mxu0 %v2739_v38 }
 0x1f1   :  { %2300 = vmatprep.subr.bf16.mxu0 %v2742_v39 }
 0x1f4   :  { %2301 = vmatpush3.bf16.msra.mxu0 %v2743_v40 }
 0x1f5   :  { %2302 = vmatprep.subr.bf16.mxu0 %v2746_v41 }
 0x1f8   :  { %2303 = vmatpush3.bf16.msra.mxu0 %v2747_v42  ;;  %v2754_v42 = vld [vmem:[#allocation2 + $0x140] sm:$0xff]  }
 0x1f9   :  { %2304 = vmatprep.subr.bf16.mxu0 %v2750_v43 }
 0x1fc   :  { %2305 = vmatpush3.bf16.msra.mxu0 %v2751_v44 }
 0x1fd   :  { %2306 = vmatprep.subr.bf16.mxu0 %v2752_v45  ;;  %v2755_v45 = vld [vmem:[#allocation2 + $0x100] sm:$0xff]  }
 0x200   :  { %2307 = vmatpush3.bf16.msra.mxu0 %v2753_v46  ;;  %v2756_v46 = vld [vmem:[#allocation2 + $0x148] sm:$0xff]  }
 0x201   :  { %2553 = vmatprep.subr.bf16.mxu0 %v2897_v0 }
 0x2b6   :  { %v265_v58 = vpop.f32.mrb[8].mxu0 }
 0x2b7   :  { %v2544_v59 = vpop.f32.mrb[9].mxu0 }
 0x2b8   :  { %v268_v60 = vpop.f32.mrb[10].mxu0  ;;  %v2769_v59 = vld [vmem:[#allocation2 + $0x138] sm:$0xff]  }
 0x2b9   :  { %v272_v61 = vpack.c.bf16 %v268_v60, %v265_v58  ;;  %v2545_v62 = vpop.f32.mrb[11].mxu0  ;;  %v2768_v58 = vld [vmem:[#allocation2 + $0x178] sm:$0xff]   ;;  %v3057_v60 = vld [vmem:[%s3159_s4] sm:$0x3] }
 0x2bb   :  { %544 = vmatprep.mubr.bf16.mxu0 %v272_v61  ;;  %v71_v61 = vld [vmem:[%s3161_s6] sm:$0x3] }
 0x2bc   :  { %545 = vmatmul.mubr.bf16.vlgmr.msra.gmra.mrb[12].mxu0 %v230_v30  ;;  %630 = vperm.xlu0 %2719, %v71_v61   ;;  %v1285_v61 = vld [vmem:[#allocation5 + $0x130] sm:$0xff] }
 0x2bd   :  { %2555 = vmatprep.mubr.msk.bf16.mxu0 %vm2898_vm0, %v2897_v0 }
 0x38f   :  { %v2308_v3 = vpop.f32.mrb[12].mxu0 }
 0x390   :  { %v2309_v6 = vpop.f32.mrb[13].mxu0 }
 0x391   :  { %v2310_v8 = vadd.f32 %v2309_v6, %v2308_v3  ;;  %v2311_v9 = vpop.f32.mrb[14].mxu0  ;;  %v2770_v3 = vld [vmem:[#allocation2 + $0x1c0] sm:$0xff]  }
 0x392   :  { %v2312_v10 = vpop.f32.mrb[15].mxu0 }
 0x393   :  { %v547_v12 = vadd.f32 %v2310_v8, %v506_v2  ;;  %v2313_v13 = vadd.f32 %v2312_v10, %v2311_v9  ;;  %v2771_v9 = vld [vmem:[#allocation2 + $0x180] sm:$0xff]   ;;  %v2772_v10 = vld [vmem:[#allocation2 + $0x1c8] sm:$0xff]  }
 0x395   :  { %v553_v14 = vmax.f32 %v547_v12, 0.0  ;;  %v550_v15 = vadd.f32 %v2313_v13, %v509_v11  ;;  %v2773_v11 = vld [vmem:[#allocation2 + $0x188] sm:$0xff]   ;;  %v2774_v12 = vld [vmem:[#allocation2 + $0x1d0] sm:$0xff]  }
 0x396   :  { %v2775_v13 = vld [vmem:[#allocation2 + $0x190] sm:$0xff]  }
 0x397   :  { %v554_v18 = vmax.f32 %v550_v15, 0.0  ;;  %v656_v19 = vadd.f32 %v3023_v5, %v553_v14  ;;  %v654_v20 = vadd.f32 %v3025_v7, %v553_v14  ;;  %v2777_v15 = vld [vmem:[#allocation2 + $0x198] sm:$0xff]  }
 0x399   :  { %v657_v21 = vadd.f32 %v3027_v16, %v554_v18  ;;  %v655_v22 = vadd.f32 %v3029_v17, %v554_v18  ;;  %v3035_v23 = vpack.c.bf16 %v554_v18, %v553_v14  ;;  %v2776_v14 = vld [vmem:[#allocation2 + $0x1d8] sm:$0xff]   ;;  %v2778_v18 = vld [vmem:[#allocation2 + $0x1e0] sm:$0xff]  }
 0x39b   :  { %v665_v24 = vmax.f32 %v656_v19, %v657_v21  ;;  %v658_v25 = vmax.f32 %v654_v20, %v655_v22  ;;  %2605 = vmatpush3.bf16.msra.mxu1 %v3035_v23  ;;  %2554 = vmatpush3.bf16.msra.mxu0 %v3035_v23  ;;  %v2779_v19 = vld [vmem:[#allocation2 + $0x1a0] sm:$0xff]   ;;  %v2780_v20 = vld [vmem:[#allocation2 + $0x1e8] sm:$0xff]   ;;  %v2783_v22 = vld [vmem:[#allocation2 + $0x1b0] sm:$0xff]  }
 0x39c   :  { %2559 = vmatprep.subr.bf16.mxu0 %v2897_v0  ;;  %2565 = vmatprep.subr.bf16.mxu1 %v2897_v0  ;;  %v2781_v21 = vld [vmem:[#allocation2 + $0x1a8] sm:$0xff]  }
 0x39d   :  { %v666_v26 = vrot.slane %v665_v24, 4  ;;  %v659_v27 = vrot.slane %v658_v25, 4 }
 0x39e   :  { %2556 = vmatmul.mubr.msk.bf16.vlgmr.msra.gmra.mrb[16].mxu0 %vm143_vm1, %v2988_v4  ;;  %2551 = vmatmul.mubr.msk.f32.vlgmr.msra.gmra.mrb[4].mxu1 %vm143_vm1, %v3057_v60 }
 0x39f   :  { %v667_v28 = vmax.f32 %v665_v24, %v666_v26  ;;  %v660_v29 = vmax.f32 %v658_v25, %v659_v27  ;;  %2561 = vmatprep.mubr.msk.bf16.mxu0 %vm2898_vm0, %v2897_v0  ;;  %2567 = vmatprep.mubr.msk.bf16.mxu1 %vm2898_vm0, %v2897_v0 }
 0x3a1   :  { %v668_v30 = vrot.slane %v667_v28, 2  ;;  %v661_v31 = vrot.slane %v660_v29, 2 }
 0x3a3   :  { %v669_v32 = vmax.f32 %v667_v28, %v668_v30  ;;  %v662_v33 = vmax.f32 %v660_v29, %v661_v31  ;;  %v2784_v31 = vld [vmem:[#allocation2 + $0x1f8] sm:$0xff]  }
 0x3a5   :  { %v670_v34 = vrot.slane %v669_v32, 1  ;;  %v663_v35 = vrot.slane %v662_v33, 1 }
 0x3a7   :  { %v664_v36 = vmax.f32 %v662_v33, %v663_v35  ;;  %v671_v37 = vmax.f32 %v669_v32, %v670_v34  ;;  %v2785_v32 = vld [vmem:[#allocation2 + $0x1b8] sm:$0xff]  }
 0x3a9   :  { %v3046_v38 = vsel %vm674_vm2, %v671_v37, %v664_v36 }
 0x471   :  { %v811_v39 = vpop.f32.mrb[16].mxu0  ;;  %v3072_v29 = vpop.f32.mrb[4].mxu1 }
 0x472   :  { %v2557_v40 = vpop.f32.mrb[17].mxu0  ;;  %v2552_v30 = vpop.f32.mrb[5].mxu1 }
 0x473   :  { %v814_v41 = vpop.f32.mrb[18].mxu0  ;;  %v1296_v40 = vld [vmem:[#allocation5 + $0x188] sm:$0xff]  ;;  %v2191_v30 = vld [vmem:[%s3158_s3 + $0x1] ss:$0 sm:$0xff] }
 0x474   :  { %v818_v43 = vpack.c.bf16 %v814_v41, %v811_v39  ;;  %v2558_v44 = vpop.f32.mrb[19].mxu0  ;;  %v1295_v39 = vld [vmem:[#allocation5 + $0x180] sm:$0xff] }
 0x475   :  { %v1279_v41 = vld [vmem:[#allocation5 + $0x100] sm:$0xff]  ;;  %v1297_v44 = vld [vmem:[#allocation5 + $0x190] sm:$0xff] }
 0x476   :  { %2560 = vmatpush3.bf16.msra.mxu0 %v818_v43 }
 0x477   :  { %2323 = vmatprep.subr.bf16.mxu0 %v2754_v42  ;;  %v2609_v42 = vpack.c.bf16 %v1296_v40, %v1295_v39 }
 0x479   :  { %2562 = vmatmul.mubr.msk.bf16.vlgmr.msra.gmra.mrb[20].mxu0 %vm143_vm1, %v2988_v4 }
 0x47a   :  { %2324 = vmatpush3.bf16.msra.mxu0 %v2755_v45  ;;  %1133 = vmatprep.mubr.bf16.mxu0 %v818_v43  ;;  %v1280_v43 = vld [vmem:[#allocation5 + $0x108] sm:$0xff]  ;;  %v1298_v45 = vld [vmem:[#allocation5 + $0x198] sm:$0xff] }
 0x47b   :  { %2325 = vmatprep.subr.bf16.mxu0 %v2756_v46  ;;  %v2611_v46 = vpack.c.bf16 %v1280_v43, %v1279_v41  ;;  %v693_v43 = vld [vmem:[#allocation5 + $0x80] sm:$0xff] }
 0x47e   :  { %2326 = vmatpush3.bf16.msra.mxu0 %v2757_v47  ;;  %v2613_v47 = vpack.c.bf16 %v1298_v45, %v1297_v44  ;;  %v694_v44 = vld [vmem:[#allocation5 + $0x88] sm:$0xff] }
 0x47f   :  { %2327 = vmatprep.subr.bf16.mxu0 %v2758_v48  ;;  %v1281_v48 = vld [vmem:[#allocation5 + $0x110] sm:$0xff] }
 0x482   :  { %2328 = vmatpush3.bf16.msra.mxu0 %v2759_v49  ;;  %v1282_v49 = vld [vmem:[#allocation5 + $0x118] sm:$0xff] }
 0x483   :  { %2329 = vmatprep.subr.bf16.mxu0 %v2760_v50  ;;  %v1299_v50 = vld [vmem:[#allocation5 + $0x1a0] sm:$0xff] }
 0x486   :  { %2330 = vmatpush3.bf16.msra.mxu0 %v2761_v51  ;;  %v1300_v51 = vld [vmem:[#allocation5 + $0x1a8] sm:$0xff] }
 0x487   :  { %2331 = vmatprep.subr.bf16.mxu0 %v2762_v52  ;;  %v2615_v52 = vpack.c.bf16 %v1282_v49, %v1281_v48  ;;  %v677_v48 = vld [vmem:[#allocation5] sm:$0xff]  ;;  %v678_v49 = vld [vmem:[#allocation5 + $0x8] sm:$0xff] }
 0x48a   :  { %2332 = vmatpush3.bf16.msra.mxu0 %v2763_v53  ;;  %v2617_v53 = vpack.c.bf16 %v1300_v51, %v1299_v50 }
 0x48b   :  { %2333 = vmatprep.subr.bf16.mxu0 %v2764_v54  ;;  %v1283_v54 = vld [vmem:[#allocation5 + $0x120] sm:$0xff] }
 0x48e   :  { %2334 = vmatpush3.bf16.msra.mxu0 %v2765_v55  ;;  %v1284_v55 = vld [vmem:[#allocation5 + $0x128] sm:$0xff] }
 0x48f   :  { %2335 = vmatprep.subr.bf16.mxu0 %v2766_v56  ;;  %v1301_v56 = vld [vmem:[#allocation5 + $0x1b0] sm:$0xff] }
 0x492   :  { %2336 = vmatpush3.bf16.msra.mxu0 %v2767_v57  ;;  %v1302_v57 = vld [vmem:[#allocation5 + $0x1b8] sm:$0xff] }
 0x493   :  { %2337 = vmatprep.subr.bf16.mxu0 %v2768_v58  ;;  %v2619_v58 = vpack.c.bf16 %v1284_v55, %v1283_v54  ;;  %v3085_v54 = vpop.permute.xlu0 %630 }
 0x496   :  { %2338 = vmatpush3.bf16.msra.mxu0 %v2769_v59  ;;  %v2621_v59 = vpack.c.bf16 %v1302_v57, %v1301_v56  ;;  %v2643_v57 = vpack.c.bf16 %v678_v49, %v677_v48  ;;  %v689_v49 = vld [vmem:[#allocation5 + $0x60] sm:$0xff] }
 0x497   :  { %2606 = vmatprep.subr.bf16.mxu0 %v2900_v63 }
 0x499   :  { %1134 = vmatmul.mubr.bf16.vlgmr.msra.gmra.mrb[24].mxu0 %v3035_v23 }
 0x49a   :  { %2575 = vmatprep.mubr.msk.f32.mxu0 %vm2898_vm0, %v2897_v0 }
 0x54c   :  { %v853_v62 = vpop.f32.mrb[20].mxu0 }
 0x54d   :  { %v2563_v1 = vpop.f32.mrb[21].mxu0 }
 0x54e   :  { %v856_v2 = vpop.f32.mrb[22].mxu0  ;;  %v1303_v1 = vld [vmem:[#allocation5 + $0x1c0] sm:$0xff] }
 0x54f   :  { %v860_v6 = vpack.c.bf16 %v856_v2, %v853_v62  ;;  %v2564_v8 = vpop.f32.mrb[23].mxu0  ;;  %v1286_v62 = vld [vmem:[#allocation5 + $0x138] sm:$0xff]  ;;  %v1304_v2 = vld [vmem:[#allocation5 + $0x1c8] sm:$0xff] }
 0x550   :  { %v1287_v8 = vld [vmem:[#allocation5 + $0x140] sm:$0xff] }
 0x551   :  { %2566 = vmatpush3.bf16.msra.mxu1 %v860_v6 }
 0x552   :  { %2345 = vmatprep.subr.bf16.mxu1 %v2770_v3  ;;  %v2623_v3 = vpack.c.bf16 %v1286_v62, %v1285_v61  ;;  %v680_v61 = vld [vmem:[#allocation5 + $0x18] sm:$0xff]  ;;  %v633_v62 = vmul.f32 %v3085_v54, %v3072_v29 }
 0x554   :  { %2568 = vmatmul.mubr.msk.bf16.vlgmr.msra.gmra.mrb[8].mxu1 %vm143_vm1, %v2988_v4  ;;  %v2782_v4 = vld [vmem:[#allocation2 + $0x1f0] sm:$0xff]  }
 0x555   :  { %2346 = vmatpush3.bf16.msra.mxu1 %v2771_v9  ;;  %v1288_v9 = vld [vmem:[#allocation5 + $0x148] sm:$0xff] }
 0x556   :  { %2347 = vmatprep.subr.bf16.mxu1 %v2772_v10  ;;  %v1305_v10 = vld [vmem:[#allocation5 + $0x1d0] sm:$0xff] }
 0x559   :  { %2348 = vmatpush3.bf16.msra.mxu1 %v2773_v11  ;;  %v1306_v11 = vld [vmem:[#allocation5 + $0x1d8] sm:$0xff] }
 0x55a   :  { %2349 = vmatprep.subr.bf16.mxu1 %v2774_v12  ;;  %v2627_v12 = vpack.c.bf16 %v1288_v9, %v1287_v8 }
 0x55d   :  { %2350 = vmatpush3.bf16.msra.mxu1 %v2775_v13  ;;  %v2629_v13 = vpack.c.bf16 %v1306_v11, %v1305_v10 }
 0x55e   :  { %2351 = vmatprep.subr.bf16.mxu1 %v2776_v14  ;;  %v1289_v14 = vld [vmem:[#allocation5 + $0x150] sm:$0xff] }
 0x561   :  { %2352 = vmatpush3.bf16.msra.mxu1 %v2777_v15  ;;  %v1290_v15 = vld [vmem:[#allocation5 + $0x158] sm:$0xff] }
 0x562   :  { %2353 = vmatprep.subr.bf16.mxu1 %v2778_v18  ;;  %v1307_v18 = vld [vmem:[#allocation5 + $0x1e0] sm:$0xff] }
 0x565   :  { %2354 = vmatpush3.bf16.msra.mxu1 %v2779_v19  ;;  %v1308_v19 = vld [vmem:[#allocation5 + $0x1e8] sm:$0xff] }
 0x566   :  { %2355 = vmatprep.subr.bf16.mxu1 %v2780_v20  ;;  %v2631_v20 = vpack.c.bf16 %v1290_v15, %v1289_v14  ;;  %v699_v14 = vld [vmem:[#allocation5 + $0xb0] sm:$0xff]  ;;  %v700_v15 = vld [vmem:[#allocation5 + $0xb8] sm:$0xff] }
 0x569   :  { %2356 = vmatpush3.bf16.msra.mxu1 %v2781_v21  ;;  %v2633_v21 = vpack.c.bf16 %v1308_v19, %v1307_v18 }
 0x56a   :  { %2357 = vmatprep.subr.bf16.mxu1 %v2782_v4  ;;  %v1291_v4 = vld [vmem:[#allocation5 + $0x160] sm:$0xff] }
 0x56c   :  { %v2339_v23 = vpop.f32.mrb[24].mxu0 }
 0x56d   :  { %v2340_v24 = vpop.f32.mrb[25].mxu0  ;;  %2358 = vmatpush3.bf16.msra.mxu1 %v2783_v22  ;;  %v1292_v22 = vld [vmem:[#allocation5 + $0x168] sm:$0xff] }
 0x56e   :  { %v3068_v25 = vadd.f32 %v2340_v24, %v2339_v23  ;;  %v2342_v26 = vpop.f32.mrb[26].mxu0  ;;  %2359 = vmatprep.subr.bf16.mxu1 %v2784_v31  ;;  %v1309_v23 = vld [vmem:[#allocation5 + $0x1f0] sm:$0xff]  ;;  %v1310_v24 = vld [vmem:[#allocation5 + $0x1f8] sm:$0xff] }
 0x56f   :  { %v2343_v27 = vpop.f32.mrb[27].mxu0 }
 0x570   :  { %v3070_v28 = vadd.f32 %v2343_v27, %v2342_v26  ;;  %v2635_v26 = vpack.c.bf16 %v1292_v22, %v1291_v4  ;;  %v2637_v27 = vpack.c.bf16 %v1310_v24, %v1309_v23  ;;  %v2653_v4 = vpack.c.bf16 %v700_v15, %v699_v14  ;;  %v683_v22 = vld [vmem:[#allocation5 + $0x30] sm:$0xff]  ;;  %v684_v23 = vld [vmem:[#allocation5 + $0x38] sm:$0xff]  ;;  %v701_v24 = vld [vmem:[#allocation5 + $0xc0] sm:$0xff] }
 0x571   :  { %2360 = vmatpush3.bf16.msra.mxu1 %v2785_v32 }
 0x572   :  { %2610 = vmatprep.subr.bf16.mxu1 %v2609_v42 }
 0x627   :  { %v895_v33 = vpop.f32.mrb[8].mxu1 }
 0x628   :  { %v2569_v34 = vpop.f32.mrb[9].mxu1 }
 0x629   :  { %v898_v35 = vpop.f32.mrb[10].mxu1 }
 0x62a   :  { %v902_v36 = vpack.c.bf16 %v898_v35, %v895_v33  ;;  %v2570_v37 = vpop.f32.mrb[11].mxu1  ;;  %v1136_v33 = vadd.f32 %v3068_v25, %v2191_v30 }
 0x62b   :  { %v1139_v37 = vadd.f32 %v3070_v28, %v2191_v30  ;;  %v695_v28 = vld [vmem:[#allocation5 + $0x90] sm:$0xff] }
 0x62c   :  { %1174 = vmatprep.mubr.bf16.mxu1 %v902_v36 }
 0x62d   :  { %1175 = vmatmul.mubr.bf16.vlgmr.msra.gmra.mrb[12].mxu1 %v860_v6  ;;  %v2625_v6 = vpack.c.bf16 %v1304_v2, %v1303_v1 }
 0x62e   :  { %2612 = vmatpush3.bf16.msra.mxu1 %v2611_v46 }
 0x62f   :  { %2614 = vmatprep.subr.bf16.mxu1 %v2613_v47  ;;  %v2641_v47 = vpack.c.bf16 %v694_v44, %v693_v43  ;;  %v687_v43 = vld [vmem:[#allocation5 + $0x50] sm:$0xff]  ;;  %v688_v44 = vld [vmem:[#allocation5 + $0x58] sm:$0xff] }
 0x632   :  { %2616 = vmatpush3.bf16.msra.mxu1 %v2615_v52 }
 0x633   :  { %2618 = vmatprep.subr.bf16.mxu1 %v2617_v53  ;;  %v696_v53 = vld [vmem:[#allocation5 + $0x98] sm:$0xff] }
 0x636   :  { %2620 = vmatpush3.bf16.msra.mxu1 %v2619_v58  ;;  %v2645_v58 = vpack.c.bf16 %v696_v53, %v695_v28 }
 0x637   :  { %2622 = vmatprep.subr.bf16.mxu1 %v2621_v59  ;;  %v679_v59 = vld [vmem:[#allocation5 + $0x10] sm:$0xff] }
 0x638   :  { %v2647_v10 = vpack.c.bf16 %v680_v61, %v679_v59  ;;  %v1294_v59 = vld [vmem:[#allocation5 + $0x178] sm:$0xff] }
 0x63a   :  { %2624 = vmatpush3.bf16.msra.mxu1 %v2623_v3  ;;  %v697_v3 = vld [vmem:[#allocation5 + $0xa0] sm:$0xff] }
 0x63b   :  { %2626 = vmatprep.subr.bf16.mxu1 %v2625_v6  ;;  %v698_v6 = vld [vmem:[#allocation5 + $0xa8] sm:$0xff] }
 0x63c   :  { %v2649_v11 = vpack.c.bf16 %v698_v6, %v697_v3 }
 0x63e   :  { %2628 = vmatpush3.bf16.msra.mxu1 %v2627_v12  ;;  %v681_v12 = vld [vmem:[#allocation5 + $0x20] sm:$0xff] }
 0x63f   :  { %2630 = vmatprep.subr.bf16.mxu1 %v2629_v13  ;;  %v682_v13 = vld [vmem:[#allocation5 + $0x28] sm:$0xff] }
 0x640   :  { %v2651_v19 = vpack.c.bf16 %v682_v13, %v681_v12 }
 0x642   :  { %2632 = vmatpush3.bf16.msra.mxu1 %v2631_v20 }
 0x643   :  { %2634 = vmatprep.subr.bf16.mxu1 %v2633_v21 }
 0x646   :  { %2636 = vmatpush3.bf16.msra.mxu1 %v2635_v26  ;;  %v702_v26 = vld [vmem:[#allocation5 + $0xc8] sm:$0xff] }
 0x647   :  { %2638 = vmatprep.subr.bf16.mxu1 %v2637_v27 }
 0x700   :  { %v2361_v31 = vpop.f32.mrb[12].mxu1 }
 0x701   :  { %v2362_v32 = vpop.f32.mrb[13].mxu1 }
 0x702   :  { %v2363_v34 = vadd.f32 %v2362_v32, %v2361_v31  ;;  %v2364_v35 = vpop.f32.mrb[14].mxu1  ;;  %v2655_v31 = vpack.c.bf16 %v684_v23, %v683_v22  ;;  %v2790_v22 = vld [vmem:[#allocation2 + $0x250] sm:$0xff]  }
 0x703   :  { %v2365_v36 = vpop.f32.mrb[15].mxu1  ;;  %v2791_v23 = vld [vmem:[#allocation2 + $0x210] sm:$0xff]  }
 0x704   :  { %v1177_v39 = vadd.f32 %v2363_v34, %v1136_v33  ;;  %v2366_v40 = vadd.f32 %v2365_v36, %v2364_v35  ;;  %v2657_v34 = vpack.c.bf16 %v702_v26, %v701_v24  ;;  %v685_v35 = vld [vmem:[#allocation5 + $0x40] sm:$0xff]  ;;  %v686_v36 = vld [vmem:[#allocation5 + $0x48] sm:$0xff]  ;;  %v2792_v24 = vld [vmem:[#allocation2 + $0x258] sm:$0xff]  }
 0x705   :  { %v2793_v26 = vld [vmem:[#allocation2 + $0x218] sm:$0xff]  }
 0x706   :  { %v1183_v41 = vmax.f32 %v1177_v39, 0.0  ;;  %v1180_v42 = vadd.f32 %v2366_v40, %v1139_v37  ;;  %v703_v37 = vld [vmem:[#allocation5 + $0xd0] sm:$0xff]  ;;  %v704_v39 = vld [vmem:[#allocation5 + $0xd8] sm:$0xff] }
 0x708   :  { %v1184_v45 = vmax.f32 %v1180_v42, 0.0  ;;  %v1256_v46 = vadd.f32 %v1183_v41, %v3025_v7  ;;  %v1258_v50 = vadd.f32 %v1183_v41, %v3023_v5  ;;  %v2661_v42 = vpack.c.bf16 %v704_v39, %v703_v37 }
 0x70a   :  { %v1257_v25 = vadd.f32 %v1184_v45, %v3029_v17  ;;  %v1259_v51 = vadd.f32 %v1184_v45, %v3027_v16  ;;  %v3083_v52 = vpack.c.bf16 %v1184_v45, %v1183_v41  ;;  %v2659_v41 = vpack.c.bf16 %v686_v36, %v685_v35  ;;  %v705_v45 = vld [vmem:[#allocation5 + $0xe0] sm:$0xff]  ;;  %v2800_v35 = vld [vmem:[#allocation2 + $0x278] sm:$0xff]  }
 0x70b   :  { %v2801_v36 = vld [vmem:[#allocation2 + $0x238] sm:$0xff]  }
 0x70c   :  { %v1260_v55 = vmax.f32 %v1256_v46, %v1257_v25  ;;  %v1267_v56 = vmax.f32 %v1258_v50, %v1259_v51  ;;  %2608 = vmatpush3.bf16.msra.mxu0 %v3083_v52  ;;  %v706_v46 = vld [vmem:[#allocation5 + $0xe8] sm:$0xff]  ;;  %v707_v25 = vld [vmem:[#allocation5 + $0xf0] sm:$0xff]  ;;  %v708_v51 = vld [vmem:[#allocation5 + $0xf8] sm:$0xff] }
 0x70d   :  { %2642 = vmatprep.subr.bf16.mxu0 %v2641_v47  ;;  %v2663_v47 = vpack.c.bf16 %v688_v44, %v687_v43  ;;  %v2665_v48 = vpack.c.bf16 %v706_v46, %v705_v45  ;;  %v690_v50 = vld [vmem:[#allocation5 + $0x68] sm:$0xff]  ;;  %v2669_v53 = vpack.c.bf16 %v708_v51, %v707_v25  ;;  %v2803_v44 = vld [vmem:[#allocation2 + $0x280] sm:$0xff]   ;;  %v2807_v46 = vld [vmem:[#allocation2 + $0x290] sm:$0xff]  }
 0x70e   :  { %v1261_v1 = vrot.slane %v1260_v55, 4  ;;  %v1268_v2 = vrot.slane %v1267_v56, 4  ;;  %v2667_v28 = vpack.c.bf16 %v690_v50, %v689_v49  ;;  %v2804_v45 = vld [vmem:[#allocation2 + $0x2c8] sm:$0xff]   ;;  %v2811_v49 = vld [vmem:[#allocation2 + $0x2a0] sm:$0xff]   ;;  %v2814_v51 = vld [vmem:[#allocation2 + $0x2f0] sm:$0xff]  }
 0x70f   :  { %2576 = vmatmul.mubr.msk.f32.vlgmr.msra.gmra.mrb[28].mxu0 %vm143_vm1, %v3057_v60  ;;  %v2812_v50 = vld [vmem:[#allocation2 + $0x2e8] sm:$0xff]  }
 0x710   :  { %v1262_v8 = vmax.f32 %v1260_v55, %v1261_v1  ;;  %v1269_v9 = vmax.f32 %v1267_v56, %v1268_v2  ;;  %2644 = vmatpush3.bf16.msra.mxu0 %v2643_v57  ;;  %1445 = vmatprep.mubr.f32.mxu0 %v633_v62  ;;  %v691_v55 = vld [vmem:[#allocation5 + $0x70] sm:$0xff]  ;;  %v692_v56 = vld [vmem:[#allocation5 + $0x78] sm:$0xff]  ;;  %v2813_v25 = vld [vmem:[#allocation2 + $0x2a8] sm:$0xff]  }
 0x711   :  { %2646 = vmatprep.subr.bf16.mxu0 %v2645_v58  ;;  %v2671_v57 = vpack.c.bf16 %v692_v56, %v691_v55  ;;  %v1293_v58 = vld [vmem:[#allocation5 + $0x170] sm:$0xff] }
 0x712   :  { %v1263_v18 = vrot.slane %v1262_v8, 2  ;;  %v1270_v29 = vrot.slane %v1269_v9, 2  ;;  %v2639_v61 = vpack.c.bf16 %v1294_v59, %v1293_v58 }
 0x714   :  { %2648 = vmatpush3.bf16.msra.mxu0 %v2647_v10  ;;  %v1264_v20 = vmax.f32 %v1262_v8, %v1263_v18  ;;  %v1271_v21 = vmax.f32 %v1269_v9, %v1270_v29  ;;  %2640 = vmatpush3.bf16.msra.mxu1 %v2639_v61  ;;  %v2786_v18 = vld [vmem:[#allocation2 + $0x240] sm:$0xff]   ;;  %v2816_v61 = vld [vmem:[#allocation2 + $0x2f8] sm:$0xff]  }
 0x715   :  { %2650 = vmatprep.subr.bf16.mxu0 %v2649_v11  ;;  %2578 = vmatprep.subr.bf16.mxu1 %v2897_v0 }
 0x716   :  { %v1265_v27 = vrot.slane %v1264_v20, 1  ;;  %v1272_v30 = vrot.slane %v1271_v21, 1 }
 0x718   :  { %2652 = vmatpush3.bf16.msra.mxu0 %v2651_v19  ;;  %v1266_v32 = vmax.f32 %v1264_v20, %v1265_v27  ;;  %v1273_v33 = vmax.f32 %v1271_v21, %v1272_v30  ;;  %v2787_v20 = vld [vmem:[#allocation2 + $0x200] sm:$0xff]   ;;  %v2788_v21 = vld [vmem:[#allocation2 + $0x248] sm:$0xff]  }
 0x719   :  { %2654 = vmatprep.subr.bf16.mxu0 %v2653_v4  ;;  %v2789_v4 = vld [vmem:[#allocation2 + $0x208] sm:$0xff]   ;;  %v2794_v27 = vld [vmem:[#allocation2 + $0x260] sm:$0xff]  }
 0x71a   :  { %v1276_v40 = vsel %vm674_vm2, %v1273_v33, %v1266_v32  ;;  %v2795_v30 = vld [vmem:[#allocation2 + $0x220] sm:$0xff]   ;;  %v2797_v32 = vld [vmem:[#allocation2 + $0x228] sm:$0xff]   ;;  %v2798_v33 = vld [vmem:[#allocation2 + $0x270] sm:$0xff]  }
 0x71c   :  { %2656 = vmatpush3.bf16.msra.mxu0 %v2655_v31  ;;  %v2796_v31 = vld [vmem:[#allocation2 + $0x268] sm:$0xff]  }
 0x71d   :  { %2658 = vmatprep.subr.bf16.mxu0 %v2657_v34  ;;  %v2799_v34 = vld [vmem:[#allocation2 + $0x230] sm:$0xff]  }
 0x720   :  { %2660 = vmatpush3.bf16.msra.mxu0 %v2659_v41  ;;  %v2802_v41 = vld [vmem:[#allocation2 + $0x2c0] sm:$0xff]  }
 0x721   :  { %2662 = vmatprep.subr.bf16.mxu0 %v2661_v42 }
 0x724   :  { %2664 = vmatpush3.bf16.msra.mxu0 %v2663_v47  ;;  %v2809_v47 = vld [vmem:[#allocation2 + $0x298] sm:$0xff]  }
 0x725   :  { %2666 = vmatprep.subr.bf16.mxu0 %v2665_v48  ;;  %v2810_v48 = vld [vmem:[#allocation2 + $0x2e0] sm:$0xff]  }
 0x728   :  { %2668 = vmatpush3.bf16.msra.mxu0 %v2667_v28  ;;  %v2815_v28 = vld [vmem:[#allocation2 + $0x2b0] sm:$0xff]  }
 0x729   :  { %2670 = vmatprep.subr.bf16.mxu0 %v2669_v53 }
 0x72c   :  { %2672 = vmatpush3.bf16.msra.mxu0 %v2671_v57 }
 0x72d   :  { %2584 = vmatprep.subr.bf16.mxu0 %v2897_v0 }
 0x72f   :  { %1446 = vmatmul.mubr.f32.vlgmr.msra.gmra.mrb[30].mxu0 %v3046_v38  ;;  %v3106_v38 = vld [vmem:[%s3155_s0] sm:$0xff]  }
 0x730   :  { %2586 = vmatprep.mubr.msk.bf16.mxu0 %vm2898_vm0, %v2897_v0 }
 0x7e2   :  { %v1251_v62 = vpop.f32.mrb[28].mxu0 }
 0x7e3   :  { %v1255_v1 = vmul.f32 %v1251_v62, %v3085_v54  ;;  %v2577_v2 = vpop.f32.mrb[29].mxu0  ;;  %v2817_v62 = vld [vmem:[#allocation2 + $0x2b8] sm:$0xff]  }
 0x7e5   :  { %1375 = vmatprep.mubr.f32.mxu1 %v1255_v1 }
 0x7e6   :  { %1376 = vmatmul.mubr.f32.vlgmr.msra.gmra.mrb[6].mxu1 %v1276_v40 }
 0x7e7   :  { %2579 = vmatpush3.bf16.msra.mxu1 %v3083_v52  ;;  %2580 = vmatprep.mubr.msk.bf16.mxu1 %vm2898_vm0, %v2897_v0 }
 0x7e8   :  { %2590 = vmatprep.subr.bf16.mxu1 %v2897_v0 }
 0x7ea   :  { %2581 = vmatmul.mubr.msk.bf16.vlgmr.msra.gmra.mrb[16].mxu1 %vm143_vm1, %v3106_v38 }
 0x7eb   :  { %2592 = vmatprep.mubr.msk.bf16.mxu1 %vm2898_vm0, %v2897_v0 }
 0x802   :  { %v2437_v3 = vpop.f32.mrb[30].mxu0 }
 0x803   :  { %v2438_v6 = vpop.f32.mrb[31].mxu0 }
 0x804   :  { %v2439_v8 = vadd.f32 %v2438_v6, %v2437_v3 }
 0x8b9   :  { %v2402_v9 = vpop.f32.mrb[6].mxu1 }
 0x8ba   :  { %v2403_v10 = vpop.f32.mrb[7].mxu1 }
 0x8bb   :  { %v2404_v11 = vadd.f32 %v2403_v10, %v2402_v9  ;;  %v2038_v9 = vld [vmem:[#allocation5 + $0x288] sm:$0xff]  ;;  %v2021_v10 = vld [vmem:[#allocation5 + $0x200] sm:$0xff] }
 0x8bd   :  { %v3112_v12 = vadd.f32 %v2439_v8, %v2404_v11  ;;  %v1553_v13 = vpop.f32.mrb[16].mxu1  ;;  %v2037_v8 = vld [vmem:[#allocation5 + $0x280] sm:$0xff] }
 0x8be   :  { %v2582_v14 = vpop.f32.mrb[17].mxu1  ;;  %v2676_v11 = vpack.c.bf16 %v2038_v9, %v2037_v8 }
 0x8bf   :  { %v1556_v15 = vpop.f32.mrb[18].mxu1  ;;  %v2039_v14 = vld [vmem:[#allocation5 + $0x290] sm:$0xff] }
 0x8c0   :  { %v1560_v29 = vpack.c.bf16 %v1556_v15, %v1553_v13  ;;  %v2583_v19 = vpop.f32.mrb[19].mxu1  ;;  %v2022_v13 = vld [vmem:[#allocation5 + $0x208] sm:$0xff]  ;;  %v2040_v15 = vld [vmem:[#allocation5 + $0x298] sm:$0xff] }
 0x8c1   :  { %v2023_v19 = vld [vmem:[#allocation5 + $0x210] sm:$0xff] }
 0x8c2   :  { %2585 = vmatpush3.bf16.msra.mxu0 %v1560_v29 }
 0x8c3   :  { %2446 = vmatprep.subr.bf16.mxu0 %v2786_v18  ;;  %v2678_v18 = vpack.c.bf16 %v2022_v13, %v2021_v10 }
 0x8c5   :  { %2587 = vmatmul.mubr.msk.bf16.vlgmr.msra.gmra.mrb[32].mxu0 %vm143_vm1, %v3106_v38 }
 0x8c6   :  { %2447 = vmatpush3.bf16.msra.mxu0 %v2787_v20  ;;  %1875 = vmatprep.mubr.bf16.mxu0 %v1560_v29  ;;  %v2680_v29 = vpack.c.bf16 %v2040_v15, %v2039_v14  ;;  %v2024_v20 = vld [vmem:[#allocation5 + $0x218] sm:$0xff] }
 0x8c7   :  { %2448 = vmatprep.subr.bf16.mxu0 %v2788_v21  ;;  %v2041_v21 = vld [vmem:[#allocation5 + $0x2a0] sm:$0xff] }
 0x8ca   :  { %2449 = vmatpush3.bf16.msra.mxu0 %v2789_v4  ;;  %v2042_v4 = vld [vmem:[#allocation5 + $0x2a8] sm:$0xff] }
 0x8cb   :  { %2450 = vmatprep.subr.bf16.mxu0 %v2790_v22  ;;  %v2682_v22 = vpack.c.bf16 %v2024_v20, %v2023_v19 }
 0x8ce   :  { %2451 = vmatpush3.bf16.msra.mxu0 %v2791_v23  ;;  %v2684_v23 = vpack.c.bf16 %v2042_v4, %v2041_v21 }
 0x8cf   :  { %2452 = vmatprep.subr.bf16.mxu0 %v2792_v24  ;;  %v2025_v24 = vld [vmem:[#allocation5 + $0x220] sm:$0xff] }
 0x8d2   :  { %2453 = vmatpush3.bf16.msra.mxu0 %v2793_v26  ;;  %v2026_v26 = vld [vmem:[#allocation5 + $0x228] sm:$0xff] }
 0x8d3   :  { %2454 = vmatprep.subr.bf16.mxu0 %v2794_v27  ;;  %v2043_v27 = vld [vmem:[#allocation5 + $0x2b0] sm:$0xff] }
 0x8d6   :  { %2455 = vmatpush3.bf16.msra.mxu0 %v2795_v30  ;;  %v2044_v30 = vld [vmem:[#allocation5 + $0x2b8] sm:$0xff] }
 0x8d7   :  { %2456 = vmatprep.subr.bf16.mxu0 %v2796_v31  ;;  %v2686_v31 = vpack.c.bf16 %v2026_v26, %v2025_v24  ;;  %v2052_v24 = vld [vmem:[#allocation5 + $0x2f8] sm:$0xff] }
 0x8da   :  { %2457 = vmatpush3.bf16.msra.mxu0 %v2797_v32  ;;  %v2688_v32 = vpack.c.bf16 %v2044_v30, %v2043_v27  ;;  %v2035_v27 = vld [vmem:[#allocation5 + $0x270] sm:$0xff]  ;;  %v2036_v30 = vld [vmem:[#allocation5 + $0x278] sm:$0xff] }
 0x8db   :  { %2458 = vmatprep.subr.bf16.mxu0 %v2798_v33  ;;  %v2027_v33 = vld [vmem:[#allocation5 + $0x230] sm:$0xff] }
 0x8de   :  { %2459 = vmatpush3.bf16.msra.mxu0 %v2799_v34  ;;  %v2028_v34 = vld [vmem:[#allocation5 + $0x238] sm:$0xff] }
 0x8df   :  { %2460 = vmatprep.subr.bf16.mxu0 %v2800_v35  ;;  %v2045_v35 = vld [vmem:[#allocation5 + $0x2c0] sm:$0xff] }
 0x8e2   :  { %2461 = vmatpush3.bf16.msra.mxu0 %v2801_v36  ;;  %v2046_v36 = vld [vmem:[#allocation5 + $0x2c8] sm:$0xff] }
 0x8e3   :  { %2673 = vmatprep.subr.bf16.mxu0 %v2900_v63  ;;  %v2805_v63 = vld [vmem:[#allocation2 + $0x288] sm:$0xff]  }
 0x8e5   :  { %1876 = vmatmul.mubr.bf16.vlgmr.msra.gmra.mrb[36].mxu0 %v3083_v52  ;;  %v2806_v52 = vld [vmem:[#allocation2 + $0x2d0] sm:$0xff]  }
 0x8e6   :  { %2600 = vmatprep.mubr.msk.f32.mxu0 %vm2898_vm0, %v2897_v0  ;;  %v2808_v0 = vld [vmem:[#allocation2 + $0x2d8] sm:$0xff]  }
 0x998   :  { %v1595_v37 = vpop.f32.mrb[32].mxu0 }
 0x999   :  { %v2588_v39 = vpop.f32.mrb[33].mxu0 }
 0x99a   :  { %v1598_v40 = vpop.f32.mrb[34].mxu0  ;;  %v2692_v39 = vpack.c.bf16 %v2046_v36, %v2045_v35 }
 0x99b   :  { %v1602_v42 = vpack.c.bf16 %v1598_v40, %v1595_v37  ;;  %v2589_v43 = vpop.f32.mrb[35].mxu0  ;;  %v2690_v37 = vpack.c.bf16 %v2028_v34, %v2027_v33  ;;  %v2029_v40 = vld [vmem:[#allocation5 + $0x240] sm:$0xff] }
 0x99c   :  { %v2048_v43 = vld [vmem:[#allocation5 + $0x2d8] sm:$0xff] }
 0x99d   :  { %2591 = vmatpush3.bf16.msra.mxu1 %v1602_v42 }
 0x99e   :  { %2468 = vmatprep.subr.bf16.mxu1 %v2802_v41  ;;  %v2030_v41 = vld [vmem:[#allocation5 + $0x248] sm:$0xff] }
 0x9a0   :  { %2593 = vmatmul.mubr.msk.bf16.vlgmr.msra.gmra.mrb[20].mxu1 %vm143_vm1, %v3106_v38 }
 0x9a1   :  { %2469 = vmatpush3.bf16.msra.mxu1 %v2803_v44  ;;  %v2694_v44 = vpack.c.bf16 %v2030_v41, %v2029_v40 }
 0x9a2   :  { %2470 = vmatprep.subr.bf16.mxu1 %v2804_v45 }
 0x9a5   :  { %2471 = vmatpush3.bf16.msra.mxu1 %v2805_v63  ;;  %v2031_v63 = vld [vmem:[#allocation5 + $0x250] sm:$0xff] }
 0x9a6   :  { %2472 = vmatprep.subr.bf16.mxu1 %v2806_v52  ;;  %v2032_v52 = vld [vmem:[#allocation5 + $0x258] sm:$0xff] }
 0x9a9   :  { %2473 = vmatpush3.bf16.msra.mxu1 %v2807_v46  ;;  %v2049_v46 = vld [vmem:[#allocation5 + $0x2e0] sm:$0xff] }
 0x9aa   :  { %2474 = vmatprep.subr.bf16.mxu1 %v2808_v0  ;;  %v2050_v0 = vld [vmem:[#allocation5 + $0x2e8] sm:$0xff] }
 0x9ad   :  { %2475 = vmatpush3.bf16.msra.mxu1 %v2809_v47  ;;  %v2698_v47 = vpack.c.bf16 %v2032_v52, %v2031_v63 }
 0x9ae   :  { %2476 = vmatprep.subr.bf16.mxu1 %v2810_v48  ;;  %v2700_v48 = vpack.c.bf16 %v2050_v0, %v2049_v46 }
 0x9b1   :  { %2477 = vmatpush3.bf16.msra.mxu1 %v2811_v49  ;;  %v2033_v49 = vld [vmem:[#allocation5 + $0x260] sm:$0xff] }
 0x9b2   :  { %2478 = vmatprep.subr.bf16.mxu1 %v2812_v50  ;;  %v2034_v50 = vld [vmem:[#allocation5 + $0x268] sm:$0xff] }
 0x9b5   :  { %2479 = vmatpush3.bf16.msra.mxu1 %v2813_v25  ;;  %v2702_v25 = vpack.c.bf16 %v2034_v50, %v2033_v49 }
 0x9b6   :  { %2480 = vmatprep.subr.bf16.mxu1 %v2814_v51  ;;  %v2229_v51 = vld [vmem:[%s3158_s3 + $0x2] ss:$0 sm:$0xff] }
 0x9b8   :  { %v2462_v53 = vpop.f32.mrb[36].mxu0 }
 0x9b9   :  { %v2463_v55 = vpop.f32.mrb[37].mxu0  ;;  %2481 = vmatpush3.bf16.msra.mxu1 %v2815_v28 }
 0x9ba   :  { %v3122_v56 = vadd.f32 %v2463_v55, %v2462_v53  ;;  %v2465_v57 = vpop.f32.mrb[38].mxu0  ;;  %2482 = vmatprep.subr.bf16.mxu1 %v2816_v61 }
 0x9bb   :  { %v2466_v58 = vpop.f32.mrb[39].mxu0 }
 0x9bc   :  { %v3124_v59 = vadd.f32 %v2466_v58, %v2465_v57  ;;  %v1878_v55 = vadd.f32 %v3122_v56, %v2229_v51 }
 0x9bd   :  { %2483 = vmatpush3.bf16.msra.mxu1 %v2817_v62 }
 0x9be   :  { %2677 = vmatprep.subr.bf16.mxu1 %v2676_v11  ;;  %v1881_v62 = vadd.f32 %v3124_v59, %v2229_v51 }
 0xa73   :  { %v1637_v1 = vpop.f32.mrb[20].mxu1 }
 0xa74   :  { %v2594_v2 = vpop.f32.mrb[21].mxu1 }
 0xa75   :  { %v1640_v38 = vpop.f32.mrb[22].mxu1 }
 0xa76   :  { %v1644_v3 = vpack.c.bf16 %v1640_v38, %v1637_v1  ;;  %v2595_v6 = vpop.f32.mrb[23].mxu1 }
 0xa78   :  { %1916 = vmatprep.mubr.bf16.mxu1 %v1644_v3 }
 0xa79   :  { %1917 = vmatmul.mubr.bf16.vlgmr.msra.gmra.mrb[24].mxu1 %v1602_v42  ;;  %v2047_v42 = vld [vmem:[#allocation5 + $0x2d0] sm:$0xff] }
 0xa7a   :  { %2679 = vmatpush3.bf16.msra.mxu1 %v2678_v18  ;;  %v2696_v45 = vpack.c.bf16 %v2048_v43, %v2047_v42 }
 0xa7b   :  { %2681 = vmatprep.subr.bf16.mxu1 %v2680_v29 }
 0xa7e   :  { %2683 = vmatpush3.bf16.msra.mxu1 %v2682_v22 }
 0xa7f   :  { %2685 = vmatprep.subr.bf16.mxu1 %v2684_v23  ;;  %v2051_v23 = vld [vmem:[#allocation5 + $0x2f0] sm:$0xff] }
 0xa80   :  { %v2704_v26 = vpack.c.bf16 %v2052_v24, %v2051_v23 }
 0xa82   :  { %2687 = vmatpush3.bf16.msra.mxu1 %v2686_v31  ;;  %v2706_v31 = vpack.c.bf16 %v2036_v30, %v2035_v27 }
 0xa83   :  { %2689 = vmatprep.subr.bf16.mxu1 %v2688_v32 }
 0xa86   :  { %2691 = vmatpush3.bf16.msra.mxu1 %v2690_v37  ;;  %v2263_v37 = vld [vmem:[%s3163_s8] ss:$0 sm:$0xff] }
 0xa87   :  { %2693 = vmatprep.subr.bf16.mxu1 %v2692_v39 }
 0xa8a   :  { %2695 = vmatpush3.bf16.msra.mxu1 %v2694_v44 }
 0xa8b   :  { %2697 = vmatprep.subr.bf16.mxu1 %v2696_v45 }
 0xa8e   :  { %2699 = vmatpush3.bf16.msra.mxu1 %v2698_v47 }
 0xa8f   :  { %2701 = vmatprep.subr.bf16.mxu1 %v2700_v48 }
 0xa92   :  { %2703 = vmatpush3.bf16.msra.mxu1 %v2702_v25 }
 0xa93   :  { %2705 = vmatprep.subr.bf16.mxu1 %v2704_v26 }
 0xa96   :  { %2707 = vmatpush3.bf16.msra.mxu1 %v2706_v31 }
 0xb4c   :  { %v2484_v28 = vpop.f32.mrb[24].mxu1 }
 0xb4d   :  { %v2485_v53 = vpop.f32.mrb[25].mxu1 }
 0xb4e   :  { %v2486_v57 = vadd.f32 %v2485_v53, %v2484_v28  ;;  %v2487_v58 = vpop.f32.mrb[26].mxu1 }
 0xb4f   :  { %v2488_v61 = vpop.f32.mrb[27].mxu1 }
 0xb50   :  { %v1919_v1 = vadd.f32 %v2486_v57, %v1878_v55  ;;  %v2489_v2 = vadd.f32 %v2488_v61, %v2487_v58 }
 0xb52   :  { %v1925_v38 = vmax.f32 %v1919_v1, 0.0  ;;  %v1922_v3 = vadd.f32 %v2489_v2, %v1881_v62 }
 0xb54   :  { %v1926_v6 = vmax.f32 %v1922_v3, 0.0  ;;  %v1998_v8 = vadd.f32 %v1925_v38, %v3025_v7  ;;  %v2000_v9 = vadd.f32 %v1925_v38, %v3023_v5 }
 0xb56   :  { %v1999_v10 = vadd.f32 %v1926_v6, %v3029_v17  ;;  %v2001_v11 = vadd.f32 %v1926_v6, %v3027_v16  ;;  %v2674_v13 = vpack.c.bf16 %v1926_v6, %v1925_v38 }
 0xb58   :  { %v2002_v56 = vmax.f32 %v1998_v8, %v1999_v10  ;;  %v2009_v14 = vmax.f32 %v2000_v9, %v2001_v11  ;;  %2675 = vmatpush3.bf16.msra.mxu0 %v2674_v13 }
 0xb5a   :  { %v2003_v15 = vrot.slane %v2002_v56, 4  ;;  %v2010_v18 = vrot.slane %v2009_v14, 4 }
 0xb5b   :  { %2601 = vmatmul.mubr.msk.f32.vlgmr.msra.gmra.mrb[40].mxu0 %vm143_vm1, %v3057_v60 }
 0xb5c   :  { %v2004_v59 = vmax.f32 %v2002_v56, %v2003_v15  ;;  %v2011_v29 = vmax.f32 %v2009_v14, %v2010_v18 }
 0xb5e   :  { %v2005_v19 = vrot.slane %v2004_v59, 2  ;;  %v2012_v20 = vrot.slane %v2011_v29, 2 }
 0xb60   :  { %v2006_v7 = vmax.f32 %v2004_v59, %v2005_v19  ;;  %v2013_v21 = vmax.f32 %v2011_v29, %v2012_v20 }
 0xb62   :  { %v2007_v5 = vrot.slane %v2006_v7, 1  ;;  %v2014_v4 = vrot.slane %v2013_v21, 1 }
 0xb64   :  { %v2008_v17 = vmax.f32 %v2006_v7, %v2007_v5  ;;  %v2015_v22 = vmax.f32 %v2013_v21, %v2014_v4 }
 0xb66   :  { %v2018_v16 = vsel %vm674_vm2, %v2015_v22, %v2008_v17 }
 0xc2e   :  { %v1993_v60 = vpop.f32.mrb[40].mxu0 }
 0xc2f   :  { %v1997_v32 = vmul.f32 %v1993_v60, %v3085_v54  ;;  %v2602_v33 = vpop.f32.mrb[41].mxu0 }
 0xc31   :  { %2117 = vmatprep.mubr.f32.mxu1 %v1997_v32 }
 0xc32   :  { %2118 = vmatmul.mubr.f32.vlgmr.msra.gmra.mrb[28].mxu1 %v2018_v16 }
 0xd05   :  { %v2525_v34 = vpop.f32.mrb[28].mxu1 }
 0xd06   :  { %v2526_v35 = vpop.f32.mrb[29].mxu1 }
 0xd07   :  { %v2527_v36 = vadd.f32 %v2526_v35, %v2525_v34 }
 0xd09   :  { %v2123_v39 = vadd.f32 %v2527_v36, %v3112_v12 }
 0xd0b   :  { %v2131_v40 = vadd.f32 %v2263_v37, %v2123_v39 }
 0xd0d   :  { %2132 = vst [vmem:[#allocation7] sm:$0x3] %v2131_v40 }
 0xd0e   :  { %2874 = shalt.err (!%p2871_p6)
}
 0xd0f   :  { %s2875_s7 = scalar_lea.hbm %s3164_s9, 32 }
 0xd10   :  { %p2876_p7 = scmp.ne.s32.totalorder %s3164_s9, %s2875_s7  ;;  %p2879_p8 = scmp.lt.u32.totalorder %s2875_s7, %s3164_s9 }
 0xd12   :  { %p2881_p9 = pnand %p2879_p8, %p2876_p7 }
 0xd14   :  { %2884 = shalt.err (!%p2881_p9)
}
 0xd15   :  { %2142 = dma.vmem_to_hbm [thread:$0]  %s2140_s15, 32, %s3164_s9, [#allocation4]  }
 0xd16   :  { %2889 = dma.done.wait [#allocation4], 32  }
 0xd17   :  { %2890 = vsyncadd [#allocation4], 4294967264 }
 0xd18   :  { %2146 = vsyncpa [#allocation3], 1 }
 0xd19   :  { %2147 = vsyncpa [#allocation6], 1 }
 0xd1a   :  { %2148 = vsyncpa [#allocation4], 1 }

</bundles_post_ra>
